<compile_context>
chip_gen: v6e
topology: v6e:2x2x1
jax: 0.10.0
libtpu: 0.0.40
codegen_flags: <defaults>
</compile_context>

<pallas_src>
import jax
import jax.numpy as jnp
from jax.experimental import pallas as pl
from jax.experimental.pallas import tpu as pltpu

BN_EPS = 1e-5
LEAKY_SLOPE = 0.2


# ---------------------------------------------------------------------------
# Fused stage kernel (channels-first: activations are (F, T), T on lanes)
# ---------------------------------------------------------------------------
def _make_fused_stage_kernel(num_layers: int, T: int, F: int, compute_dtype):
    def kernel(x_ref, m_ref, w_in_ref, b_in_ref, wd_ref, bd_ref, w1_ref,
               b1_ref, gsc_ref, gbi_ref, w_out_ref, b_out_ref, o_ref):
        # x_ref: (1, Cin, T), m_ref: (1, 1, T); weights are (Cout, Cin)-style.
        x = x_ref[0].astype(compute_dtype)            # (Cin, T)
        mask = m_ref[0]                               # (1, T) lane-dense

        # input 1x1 conv: (F, Cin) @ (Cin, T) -> (F, T), f32 accumulation
        a = (jnp.dot(w_in_ref[...], x, preferred_element_type=jnp.float32)
             + b_in_ref[...])                         # (F, T) f32, VMEM/vreg resident

        for l in range(num_layers):                   # static unroll (L small)
            d = 1 + l                                 # linear dilation
            a_c = a.astype(compute_dtype)
            zpad = jnp.zeros((F, d), compute_dtype)
            # lane-axis temporal shifts with zero boundary (== Conv1d zero pad)
            left = jnp.concatenate([zpad, a_c[:, :T - d]], axis=1)   # x[t - d]
            right = jnp.concatenate([a_c[:, d:], zpad], axis=1)      # x[t + d]
            taps = jnp.concatenate([left, a_c, right], axis=0)       # (3F, T)
            # dilated conv: all 3 taps in one (F, 3F) @ (3F, T) MXU pass
            h = jnp.dot(wd_ref[l], taps,
                        preferred_element_type=jnp.float32) + bd_ref[l]
            h = jnp.maximum(h, 0.0)                                  # ReLU
            h = (jnp.dot(w1_ref[l], h.astype(compute_dtype),         # 1x1 conv
                         preferred_element_type=jnp.float32)
                 + b1_ref[l])
            h = jnp.where(h >= 0.0, h, LEAKY_SLOPE * h)              # LeakyReLU(0.2)
            h = h * gsc_ref[l] + gbi_ref[l]                          # BN (eval, folded)
            # Dropout(0.5) is identity in eval mode.
            a = (a + h) * mask                                       # residual + mask

        # output 1x1 conv: (C, F) @ (F, T) -> (C, T), lane-dense store
        y = (jnp.dot(w_out_ref[...], a.astype(compute_dtype),
                     preferred_element_type=jnp.float32)
             + b_out_ref[...])
        o_ref[0] = (y * mask).astype(o_ref.dtype)

    return kernel


# ---------------------------------------------------------------------------
# Wrapper
# ---------------------------------------------------------------------------
def _bcast2(shape):
    return pl.BlockSpec(shape, lambda b: (0, 0))


def _bcast3(shape):
    return pl.BlockSpec(shape, lambda b: (0, 0, 0))


def single_stage_model_linear(x_ncw, mask, params, *,
                              compute_dtype=jnp.float32):
    """Matches SingleStageModelLinear.forward (eval mode).

    x_ncw: (B, dim, T) channels-first (PyTorch NCW), mask: (B, T).
    Returns (B, num_classes, T) float32.
    """
    B, Cin, T = x_ncw.shape
    Fm = params["w_in"].shape[0]
    L = params["wd"].shape[0]
    Cout = params["w_out"].shape[0]
    assert T > L, "window_size must exceed the maximum dilation"

    # Fold BatchNorm1d (eval) into scale / bias.
    gscale = params["gamma"] / jnp.sqrt(params["running_var"] + BN_EPS)   # (L, F)
    gbias = params["beta"] - params["running_mean"] * gscale              # (L, F)

    # Fold the 3 dilated-conv taps into one (F, 3F) matrix per layer.
    # params["wd"]: (L, 3, F_out, F_in) -> (L, F_out, 3*F_in), tap-major cols.
    wd_cat = jnp.transpose(params["wd"], (0, 2, 1, 3)).reshape(L, Fm, 3 * Fm)

    def cf(w):   # matmul operands in compute_dtype (bf16 option for v5e/v6e)
        return w.astype(compute_dtype)

    args = [
        x_ncw,
        mask.reshape(B, 1, T).astype(jnp.float32),
        cf(params["w_in"]),                        # (F, Cin)
        params["b_in"].reshape(Fm, 1),
        cf(wd_cat),                                # (L, F, 3F)
        params["bd"].reshape(L, Fm, 1),
        cf(params["w1"]),                          # (L, F, F)
        params["b1"].reshape(L, Fm, 1),
        gscale.reshape(L, Fm, 1),
        gbias.reshape(L, Fm, 1),
        cf(params["w_out"]),                       # (C, F)
        params["b_out"].reshape(Cout, 1),
    ]

    in_specs = [
        pl.BlockSpec((1, Cin, T), lambda b: (b, 0, 0)),
        pl.BlockSpec((1, 1, T), lambda b: (b, 0, 0)),
        _bcast2((Fm, Cin)),
        _bcast2((Fm, 1)),
        _bcast3((L, Fm, 3 * Fm)),
        _bcast3((L, Fm, 1)),
        _bcast3((L, Fm, Fm)),
        _bcast3((L, Fm, 1)),
        _bcast3((L, Fm, 1)),
        _bcast3((L, Fm, 1)),
        _bcast2((Cout, Fm)),
        _bcast2((Cout, 1)),
    ]

    # VMEM residency estimate (resident activation + taps + double-buffered
    # blocks); v7x has 64 MiB per TensorCore, so cap the scoped request there.
    w_isz = 2 if compute_dtype == jnp.bfloat16 else 4
    est = (
        4 * Fm * T + w_isz * 4 * Fm * T                       # activation + taps
        + 2 * (x_ncw.dtype.itemsize * Cin * T + 4 * T)        # x + mask (double buf)
        + 2 * 4 * Cout * T                                    # output block (double buf)
        + 2 * (w_isz * (Fm * Cin + L * (3 * Fm * Fm + Fm * Fm) + Cout * Fm)
               + 4 * (Fm + 4 * L * Fm + Cout))                # weights / biases / BN
    )
    assert est < 48 * 2**20, (
        "residency exceeds VMEM budget; tile T with a halo of sum(dilations)")
    vmem_limit = int(min(64 * 2**20, max(32 * 2**20, 2 * est + (4 << 20))))

    kernel = _make_fused_stage_kernel(L, T, Fm, compute_dtype)
    return pl.pallas_call(
        kernel,
        out_shape=jax.ShapeDtypeStruct((B, Cout, T), jnp.float32),
        grid=(B,),
        in_specs=in_specs,
        out_specs=pl.BlockSpec((1, Cout, T), lambda b: (b, 0, 0)),
        compiler_params=pltpu.CompilerParams(
            dimension_semantics=("parallel",),
            vmem_limit_bytes=vmem_limit),
    )(*args)


# ---------------------------------------------------------------------------
# Pure-JAX reference (channels-first, mirrors the PyTorch module in eval mode)
# ---------------------------------------------------------------------------
def reference_forward(x_ncw, mask, params):
    x = x_ncw.astype(jnp.float32)
    m = mask[:, None, :].astype(jnp.float32)
    out = (jnp.einsum("od,bdt->bot", params["w_in"], x)
           + params["b_in"][None, :, None])
    _, _, T = out.shape
    L = params["wd"].shape[0]
    for l in range(L):
        d = 1 + l
        wd = params["wd"][l]                      # (3, F_out, F_in)
        xp = jnp.pad(out, ((0, 0), (0, 0), (d, d)))
        conv = (jnp.einsum("oi,bit->bot", wd[0], xp[:, :, 0:T])
                + jnp.einsum("oi,bit->bot", wd[1], xp[:, :, d:d + T])
                + jnp.einsum("oi,bit->bot", wd[2], xp[:, :, 2 * d:2 * d + T])
                + params["bd"][l][None, :, None])
        h = jnp.maximum(conv, 0.0)
        h = (jnp.einsum("oi,bit->bot", params["w1"][l], h)
             + params["b1"][l][None, :, None])
        h = jnp.where(h >= 0.0, h, LEAKY_SLOPE * h)
        gscale = params["gamma"][l] / jnp.sqrt(params["running_var"][l] + BN_EPS)
        gbias = params["beta"][l] - params["running_mean"][l] * gscale
        h = h * gscale[None, :, None] + gbias[None, :, None]
        out = (out + h) * m
    out = (jnp.einsum("of,bft->bot", params["w_out"], out)
           + params["b_out"][None, :, None]) * m
    return out


# ---------------------------------------------------------------------------
# Deterministic parameter init (shapes follow the PyTorch module __init__)
# ---------------------------------------------------------------------------
def init_params(key, num_layers, num_f_maps, dim, num_classes):
    keys = jax.random.split(key, 12)
    s = 0.1
    F = num_f_maps
    L = num_layers
    return {
        # nn.Conv1d(dim, F, 1): weight (F, dim, 1) -> (F, dim)
        "w_in": s * jax.random.normal(keys[0], (F, dim), jnp.float32),
        "b_in": s * jax.random.normal(keys[1], (F,), jnp.float32),
        # nn.Conv1d(F, F, 3, dilation=1+i): weight (F, F, 3) -> (L, 3, F_out, F_in)
        "wd": s * jax.random.normal(keys[2], (L, 3, F, F), jnp.float32),
        "bd": s * jax.random.normal(keys[3], (L, F), jnp.float32),
        # nn.Conv1d(F, F, 1)
        "w1": s * jax.random.normal(keys[4], (L, F, F), jnp.float32),
        "b1": s * jax.random.normal(keys[5], (L, F), jnp.float32),
        # BatchNorm1d(F): affine params + running stats (eval-mode forward)
        "gamma": 1.0 + 0.1 * jax.random.normal(keys[6], (L, F), jnp.float32),
        "beta": 0.1 * jax.random.normal(keys[7], (L, F), jnp.float32),
        "running_mean": 0.1 * jax.random.normal(keys[8], (L, F), jnp.float32),
        "running_var": 1.0 + 0.1 * jax.random.uniform(keys[9], (L, F), jnp.float32),
        # nn.Conv1d(F, num_classes, 1)
        "w_out": s * jax.random.normal(keys[10], (num_classes, F), jnp.float32),
        "b_out": s * jax.random.normal(keys[11], (num_classes,), jnp.float32),
    }


# ---------------------------------------------------------------------------
if __name__ == "__main__":
    B, dim, T = 2, 8, 128               # (batch, dim, window_size); T lane-dense
    num_layers, num_f_maps, num_classes = 4, 32, 8

    key = jax.random.PRNGKey(0)
    k_x, k_m, k_p = jax.random.split(key, 3)

    x = jax.random.normal(k_x, (B, dim, T), jnp.float32)
    mask = (jax.random.uniform(k_m, (B, T)) > 0.2).astype(jnp.float32)
    params = init_params(k_p, num_layers, num_f_maps, dim, num_classes)

    # f32 path: strict numerical check against the pure-JAX reference.
    out = jax.block_until_ready(single_stage_model_linear(x, mask, params))
    ref = jax.block_until_ready(reference_forward(x, mask, params))
    assert out.shape == (B, num_classes, T)
    assert jnp.allclose(out, ref, rtol=1e-4, atol=1e-4), \
        f"max err {jnp.max(jnp.abs(out - ref))}"

    # bf16 matmul-operand path (v5e/v6e HBM-traffic option), loose tolerance.
    out_bf16 = jax.block_until_ready(
        single_stage_model_linear(x, mask, params, compute_dtype=jnp.bfloat16))
    assert jnp.allclose(out_bf16, ref, rtol=5e-2, atol=5e-2), \
        f"bf16 max err {jnp.max(jnp.abs(out_bf16 - ref))}"

    print("KERNEL_OK")
</pallas_src>

<mosaic_0001>
module attributes {stable_mosaic.version = 11 : i64} {
  func.func @kernel(%arg0: i32, %arg1: memref<1x8x128xf32, #tpu.memory_space<vmem>>, %arg2: memref<1x1x128xf32, #tpu.memory_space<vmem>>, %arg3: memref<32x8xf32, #tpu.memory_space<vmem>>, %arg4: memref<32x1xf32, #tpu.memory_space<vmem>>, %arg5: memref<4x32x96xf32, #tpu.memory_space<vmem>>, %arg6: memref<4x32x1xf32, #tpu.memory_space<vmem>>, %arg7: memref<4x32x32xf32, #tpu.memory_space<vmem>>, %arg8: memref<4x32x1xf32, #tpu.memory_space<vmem>>, %arg9: memref<4x32x1xf32, #tpu.memory_space<vmem>>, %arg10: memref<4x32x1xf32, #tpu.memory_space<vmem>>, %arg11: memref<8x32xf32, #tpu.memory_space<vmem>>, %arg12: memref<8x1xf32, #tpu.memory_space<vmem>>, %arg13: memref<1x8x128xf32, #tpu.memory_space<vmem>>) attributes {dimension_semantics = [#tpu.dimension_semantics<parallel>], iteration_bounds = array<i64: 2>, scalar_prefetch = 0 : i64, scratch_operands = 0 : i64, tpu.core_type = #tpu.core_type<tc>, window_params = [{transform_indices = @transform_0, window_bounds = array<i64: 1, 8, 128>}, {transform_indices = @transform_1, window_bounds = array<i64: 1, 1, 128>}, {pipeline_mode = #tpu.pipeline_mode<synchronous>, transform_indices = @transform_2, window_bounds = array<i64: 32, 8>}, {pipeline_mode = #tpu.pipeline_mode<synchronous>, transform_indices = @transform_3, window_bounds = array<i64: 32, 1>}, {pipeline_mode = #tpu.pipeline_mode<synchronous>, transform_indices = @transform_4, window_bounds = array<i64: 4, 32, 96>}, {pipeline_mode = #tpu.pipeline_mode<synchronous>, transform_indices = @transform_5, window_bounds = array<i64: 4, 32, 1>}, {pipeline_mode = #tpu.pipeline_mode<synchronous>, transform_indices = @transform_6, window_bounds = array<i64: 4, 32, 32>}, {pipeline_mode = #tpu.pipeline_mode<synchronous>, transform_indices = @transform_7, window_bounds = array<i64: 4, 32, 1>}, {pipeline_mode = #tpu.pipeline_mode<synchronous>, transform_indices = @transform_8, window_bounds = array<i64: 4, 32, 1>}, {pipeline_mode = #tpu.pipeline_mode<synchronous>, transform_indices = @transform_9, window_bounds = array<i64: 4, 32, 1>}, {pipeline_mode = #tpu.pipeline_mode<synchronous>, transform_indices = @transform_10, window_bounds = array<i64: 8, 32>}, {pipeline_mode = #tpu.pipeline_mode<synchronous>, transform_indices = @transform_11, window_bounds = array<i64: 8, 1>}, {transform_indices = @transform_12, window_bounds = array<i64: 1, 8, 128>}]} {
    %c0 = arith.constant 0 : index
    %c0_0 = arith.constant 0 : index
    %c0_1 = arith.constant 0 : index
    %0 = vector.load %arg1[%c0, %c0_0, %c0_1] : memref<1x8x128xf32, #tpu.memory_space<vmem>>, vector<1x8x128xf32>
    %1 = vector.shape_cast %0 : vector<1x8x128xf32> to vector<8x128xf32>
    %c0_2 = arith.constant 0 : index
    %c0_3 = arith.constant 0 : index
    %c0_4 = arith.constant 0 : index
    %2 = vector.load %arg2[%c0_2, %c0_3, %c0_4] : memref<1x1x128xf32, #tpu.memory_space<vmem>>, vector<1x1x128xf32>
    %3 = vector.shape_cast %2 : vector<1x1x128xf32> to vector<1x128xf32>
    %c0_5 = arith.constant 0 : index
    %c0_6 = arith.constant 0 : index
    %4 = vector.load %arg3[%c0_5, %c0_6] : memref<32x8xf32, #tpu.memory_space<vmem>>, vector<32x8xf32>
    %cst = arith.constant dense<0.000000e+00> : vector<32x128xf32>
    %5 = tpu.matmul %4, %1, %cst {dimension_numbers = #tpu.dot_dimension_numbers<[1], [0], [0], [1], [0, 0, 1, 1], [], []>} : vector<32x8xf32>, vector<8x128xf32>, vector<32x128xf32> -> vector<32x128xf32>
    %c0_7 = arith.constant 0 : index
    %c0_8 = arith.constant 0 : index
    %6 = vector.load %arg4[%c0_7, %c0_8] : memref<32x1xf32, #tpu.memory_space<vmem>>, vector<32x1xf32>
    %7 = vector.broadcast %6 : vector<32x1xf32> to vector<32x128xf32>
    %8 = arith.addf %5, %7 : vector<32x128xf32>
    %cst_9 = arith.constant 0.000000e+00 : f32
    %9 = vector.broadcast %cst_9 : f32 to vector<32x1xf32>
    %10 = vector.extract_strided_slice %8 {offsets = [0, 0], sizes = [32, 127], strides = [1, 1]} : vector<32x128xf32> to vector<32x127xf32>
    %11 = tpu.concatenate %9, %10 in 1 : vector<32x1xf32>, vector<32x127xf32> -> vector<32x128xf32>
    %12 = vector.extract_strided_slice %8 {offsets = [0, 1], sizes = [32, 127], strides = [1, 1]} : vector<32x128xf32> to vector<32x127xf32>
    %13 = tpu.concatenate %12, %9 in 1 : vector<32x127xf32>, vector<32x1xf32> -> vector<32x128xf32>
    %14 = tpu.concatenate %11, %8, %13 in 0 : vector<32x128xf32>, vector<32x128xf32>, vector<32x128xf32> -> vector<96x128xf32>
    %c0_10 = arith.constant 0 : index
    %c0_11 = arith.constant 0 : index
    %c0_12 = arith.constant 0 : index
    %15 = vector.load %arg5[%c0_10, %c0_11, %c0_12] : memref<4x32x96xf32, #tpu.memory_space<vmem>>, vector<1x32x96xf32>
    %16 = vector.shape_cast %15 : vector<1x32x96xf32> to vector<32x96xf32>
    %cst_13 = arith.constant dense<0.000000e+00> : vector<32x128xf32>
    %17 = tpu.matmul %16, %14, %cst_13 {dimension_numbers = #tpu.dot_dimension_numbers<[1], [0], [0], [1], [0, 0, 1, 1], [], []>} : vector<32x96xf32>, vector<96x128xf32>, vector<32x128xf32> -> vector<32x128xf32>
    %c0_14 = arith.constant 0 : index
    %c0_15 = arith.constant 0 : index
    %c0_16 = arith.constant 0 : index
    %18 = vector.load %arg6[%c0_14, %c0_15, %c0_16] : memref<4x32x1xf32, #tpu.memory_space<vmem>>, vector<1x32x1xf32>
    %19 = vector.shape_cast %18 : vector<1x32x1xf32> to vector<32x1xf32>
    %20 = vector.broadcast %19 : vector<32x1xf32> to vector<32x128xf32>
    %21 = arith.addf %17, %20 : vector<32x128xf32>
    %cst_17 = arith.constant 0.000000e+00 : f32
    %22 = vector.broadcast %cst_17 : f32 to vector<32x128xf32>
    %23 = arith.maximumf %21, %22 : vector<32x128xf32>
    %c0_18 = arith.constant 0 : index
    %c0_19 = arith.constant 0 : index
    %c0_20 = arith.constant 0 : index
    %24 = vector.load %arg7[%c0_18, %c0_19, %c0_20] : memref<4x32x32xf32, #tpu.memory_space<vmem>>, vector<1x32x32xf32>
    %25 = vector.shape_cast %24 : vector<1x32x32xf32> to vector<32x32xf32>
    %cst_21 = arith.constant dense<0.000000e+00> : vector<32x128xf32>
    %26 = tpu.matmul %25, %23, %cst_21 {dimension_numbers = #tpu.dot_dimension_numbers<[1], [0], [0], [1], [0, 0, 1, 1], [], []>} : vector<32x32xf32>, vector<32x128xf32>, vector<32x128xf32> -> vector<32x128xf32>
    %c0_22 = arith.constant 0 : index
    %c0_23 = arith.constant 0 : index
    %c0_24 = arith.constant 0 : index
    %27 = vector.load %arg8[%c0_22, %c0_23, %c0_24] : memref<4x32x1xf32, #tpu.memory_space<vmem>>, vector<1x32x1xf32>
    %28 = vector.shape_cast %27 : vector<1x32x1xf32> to vector<32x1xf32>
    %29 = vector.broadcast %28 : vector<32x1xf32> to vector<32x128xf32>
    %30 = arith.addf %26, %29 : vector<32x128xf32>
    %cst_25 = arith.constant 0.000000e+00 : f32
    %31 = vector.broadcast %cst_25 : f32 to vector<32x128xf32>
    %32 = arith.cmpf oge, %30, %31 : vector<32x128xf32>
    %cst_26 = arith.constant 2.000000e-01 : f32
    %33 = vector.broadcast %cst_26 : f32 to vector<32x128xf32>
    %34 = arith.mulf %33, %30 : vector<32x128xf32>
    %35 = arith.select %32, %30, %34 : vector<32x128xi1>, vector<32x128xf32>
    %c0_27 = arith.constant 0 : index
    %c0_28 = arith.constant 0 : index
    %c0_29 = arith.constant 0 : index
    %36 = vector.load %arg9[%c0_27, %c0_28, %c0_29] : memref<4x32x1xf32, #tpu.memory_space<vmem>>, vector<1x32x1xf32>
    %37 = vector.shape_cast %36 : vector<1x32x1xf32> to vector<32x1xf32>
    %38 = vector.broadcast %37 : vector<32x1xf32> to vector<32x128xf32>
    %39 = arith.mulf %35, %38 : vector<32x128xf32>
    %c0_30 = arith.constant 0 : index
    %c0_31 = arith.constant 0 : index
    %c0_32 = arith.constant 0 : index
    %40 = vector.load %arg10[%c0_30, %c0_31, %c0_32] : memref<4x32x1xf32, #tpu.memory_space<vmem>>, vector<1x32x1xf32>
    %41 = vector.shape_cast %40 : vector<1x32x1xf32> to vector<32x1xf32>
    %42 = vector.broadcast %41 : vector<32x1xf32> to vector<32x128xf32>
    %43 = arith.addf %39, %42 : vector<32x128xf32>
    %44 = arith.addf %8, %43 : vector<32x128xf32>
    %45 = vector.broadcast %3 : vector<1x128xf32> to vector<32x128xf32>
    %46 = arith.mulf %44, %45 : vector<32x128xf32>
    %cst_33 = arith.constant 0.000000e+00 : f32
    %47 = vector.broadcast %cst_33 : f32 to vector<32x2xf32>
    %48 = vector.extract_strided_slice %46 {offsets = [0, 0], sizes = [32, 126], strides = [1, 1]} : vector<32x128xf32> to vector<32x126xf32>
    %49 = tpu.concatenate %47, %48 in 1 : vector<32x2xf32>, vector<32x126xf32> -> vector<32x128xf32>
    %50 = vector.extract_strided_slice %46 {offsets = [0, 2], sizes = [32, 126], strides = [1, 1]} : vector<32x128xf32> to vector<32x126xf32>
    %51 = tpu.concatenate %50, %47 in 1 : vector<32x126xf32>, vector<32x2xf32> -> vector<32x128xf32>
    %52 = tpu.concatenate %49, %46, %51 in 0 : vector<32x128xf32>, vector<32x128xf32>, vector<32x128xf32> -> vector<96x128xf32>
    %c1 = arith.constant 1 : index
    %c0_34 = arith.constant 0 : index
    %c0_35 = arith.constant 0 : index
    %53 = vector.load %arg5[%c1, %c0_34, %c0_35] : memref<4x32x96xf32, #tpu.memory_space<vmem>>, vector<1x32x96xf32>
    %54 = vector.shape_cast %53 : vector<1x32x96xf32> to vector<32x96xf32>
    %cst_36 = arith.constant dense<0.000000e+00> : vector<32x128xf32>
    %55 = tpu.matmul %54, %52, %cst_36 {dimension_numbers = #tpu.dot_dimension_numbers<[1], [0], [0], [1], [0, 0, 1, 1], [], []>} : vector<32x96xf32>, vector<96x128xf32>, vector<32x128xf32> -> vector<32x128xf32>
    %c1_37 = arith.constant 1 : index
    %c0_38 = arith.constant 0 : index
    %c0_39 = arith.constant 0 : index
    %56 = vector.load %arg6[%c1_37, %c0_38, %c0_39] : memref<4x32x1xf32, #tpu.memory_space<vmem>>, vector<1x32x1xf32>
    %57 = vector.shape_cast %56 : vector<1x32x1xf32> to vector<32x1xf32>
    %58 = vector.broadcast %57 : vector<32x1xf32> to vector<32x128xf32>
    %59 = arith.addf %55, %58 : vector<32x128xf32>
    %cst_40 = arith.constant 0.000000e+00 : f32
    %60 = vector.broadcast %cst_40 : f32 to vector<32x128xf32>
    %61 = arith.maximumf %59, %60 : vector<32x128xf32>
    %c1_41 = arith.constant 1 : index
    %c0_42 = arith.constant 0 : index
    %c0_43 = arith.constant 0 : index
    %62 = vector.load %arg7[%c1_41, %c0_42, %c0_43] : memref<4x32x32xf32, #tpu.memory_space<vmem>>, vector<1x32x32xf32>
    %63 = vector.shape_cast %62 : vector<1x32x32xf32> to vector<32x32xf32>
    %cst_44 = arith.constant dense<0.000000e+00> : vector<32x128xf32>
    %64 = tpu.matmul %63, %61, %cst_44 {dimension_numbers = #tpu.dot_dimension_numbers<[1], [0], [0], [1], [0, 0, 1, 1], [], []>} : vector<32x32xf32>, vector<32x128xf32>, vector<32x128xf32> -> vector<32x128xf32>
    %c1_45 = arith.constant 1 : index
    %c0_46 = arith.constant 0 : index
    %c0_47 = arith.constant 0 : index
    %65 = vector.load %arg8[%c1_45, %c0_46, %c0_47] : memref<4x32x1xf32, #tpu.memory_space<vmem>>, vector<1x32x1xf32>
    %66 = vector.shape_cast %65 : vector<1x32x1xf32> to vector<32x1xf32>
    %67 = vector.broadcast %66 : vector<32x1xf32> to vector<32x128xf32>
    %68 = arith.addf %64, %67 : vector<32x128xf32>
    %cst_48 = arith.constant 0.000000e+00 : f32
    %69 = vector.broadcast %cst_48 : f32 to vector<32x128xf32>
    %70 = arith.cmpf oge, %68, %69 : vector<32x128xf32>
    %cst_49 = arith.constant 2.000000e-01 : f32
    %71 = vector.broadcast %cst_49 : f32 to vector<32x128xf32>
    %72 = arith.mulf %71, %68 : vector<32x128xf32>
    %73 = arith.select %70, %68, %72 : vector<32x128xi1>, vector<32x128xf32>
    %c1_50 = arith.constant 1 : index
    %c0_51 = arith.constant 0 : index
    %c0_52 = arith.constant 0 : index
    %74 = vector.load %arg9[%c1_50, %c0_51, %c0_52] : memref<4x32x1xf32, #tpu.memory_space<vmem>>, vector<1x32x1xf32>
    %75 = vector.shape_cast %74 : vector<1x32x1xf32> to vector<32x1xf32>
    %76 = vector.broadcast %75 : vector<32x1xf32> to vector<32x128xf32>
    %77 = arith.mulf %73, %76 : vector<32x128xf32>
    %c1_53 = arith.constant 1 : index
    %c0_54 = arith.constant 0 : index
    %c0_55 = arith.constant 0 : index
    %78 = vector.load %arg10[%c1_53, %c0_54, %c0_55] : memref<4x32x1xf32, #tpu.memory_space<vmem>>, vector<1x32x1xf32>
    %79 = vector.shape_cast %78 : vector<1x32x1xf32> to vector<32x1xf32>
    %80 = vector.broadcast %79 : vector<32x1xf32> to vector<32x128xf32>
    %81 = arith.addf %77, %80 : vector<32x128xf32>
    %82 = arith.addf %46, %81 : vector<32x128xf32>
    %83 = vector.broadcast %3 : vector<1x128xf32> to vector<32x128xf32>
    %84 = arith.mulf %82, %83 : vector<32x128xf32>
    %cst_56 = arith.constant 0.000000e+00 : f32
    %85 = vector.broadcast %cst_56 : f32 to vector<32x3xf32>
    %86 = vector.extract_strided_slice %84 {offsets = [0, 0], sizes = [32, 125], strides = [1, 1]} : vector<32x128xf32> to vector<32x125xf32>
    %87 = tpu.concatenate %85, %86 in 1 : vector<32x3xf32>, vector<32x125xf32> -> vector<32x128xf32>
    %88 = vector.extract_strided_slice %84 {offsets = [0, 3], sizes = [32, 125], strides = [1, 1]} : vector<32x128xf32> to vector<32x125xf32>
    %89 = tpu.concatenate %88, %85 in 1 : vector<32x125xf32>, vector<32x3xf32> -> vector<32x128xf32>
    %90 = tpu.concatenate %87, %84, %89 in 0 : vector<32x128xf32>, vector<32x128xf32>, vector<32x128xf32> -> vector<96x128xf32>
    %c2 = arith.constant 2 : index
    %c0_57 = arith.constant 0 : index
    %c0_58 = arith.constant 0 : index
    %91 = vector.load %arg5[%c2, %c0_57, %c0_58] : memref<4x32x96xf32, #tpu.memory_space<vmem>>, vector<1x32x96xf32>
    %92 = vector.shape_cast %91 : vector<1x32x96xf32> to vector<32x96xf32>
    %cst_59 = arith.constant dense<0.000000e+00> : vector<32x128xf32>
    %93 = tpu.matmul %92, %90, %cst_59 {dimension_numbers = #tpu.dot_dimension_numbers<[1], [0], [0], [1], [0, 0, 1, 1], [], []>} : vector<32x96xf32>, vector<96x128xf32>, vector<32x128xf32> -> vector<32x128xf32>
    %c2_60 = arith.constant 2 : index
    %c0_61 = arith.constant 0 : index
    %c0_62 = arith.constant 0 : index
    %94 = vector.load %arg6[%c2_60, %c0_61, %c0_62] : memref<4x32x1xf32, #tpu.memory_space<vmem>>, vector<1x32x1xf32>
    %95 = vector.shape_cast %94 : vector<1x32x1xf32> to vector<32x1xf32>
    %96 = vector.broadcast %95 : vector<32x1xf32> to vector<32x128xf32>
    %97 = arith.addf %93, %96 : vector<32x128xf32>
    %cst_63 = arith.constant 0.000000e+00 : f32
    %98 = vector.broadcast %cst_63 : f32 to vector<32x128xf32>
    %99 = arith.maximumf %97, %98 : vector<32x128xf32>
    %c2_64 = arith.constant 2 : index
    %c0_65 = arith.constant 0 : index
    %c0_66 = arith.constant 0 : index
    %100 = vector.load %arg7[%c2_64, %c0_65, %c0_66] : memref<4x32x32xf32, #tpu.memory_space<vmem>>, vector<1x32x32xf32>
    %101 = vector.shape_cast %100 : vector<1x32x32xf32> to vector<32x32xf32>
    %cst_67 = arith.constant dense<0.000000e+00> : vector<32x128xf32>
    %102 = tpu.matmul %101, %99, %cst_67 {dimension_numbers = #tpu.dot_dimension_numbers<[1], [0], [0], [1], [0, 0, 1, 1], [], []>} : vector<32x32xf32>, vector<32x128xf32>, vector<32x128xf32> -> vector<32x128xf32>
    %c2_68 = arith.constant 2 : index
    %c0_69 = arith.constant 0 : index
    %c0_70 = arith.constant 0 : index
    %103 = vector.load %arg8[%c2_68, %c0_69, %c0_70] : memref<4x32x1xf32, #tpu.memory_space<vmem>>, vector<1x32x1xf32>
    %104 = vector.shape_cast %103 : vector<1x32x1xf32> to vector<32x1xf32>
    %105 = vector.broadcast %104 : vector<32x1xf32> to vector<32x128xf32>
    %106 = arith.addf %102, %105 : vector<32x128xf32>
    %cst_71 = arith.constant 0.000000e+00 : f32
    %107 = vector.broadcast %cst_71 : f32 to vector<32x128xf32>
    %108 = arith.cmpf oge, %106, %107 : vector<32x128xf32>
    %cst_72 = arith.constant 2.000000e-01 : f32
    %109 = vector.broadcast %cst_72 : f32 to vector<32x128xf32>
    %110 = arith.mulf %109, %106 : vector<32x128xf32>
    %111 = arith.select %108, %106, %110 : vector<32x128xi1>, vector<32x128xf32>
    %c2_73 = arith.constant 2 : index
    %c0_74 = arith.constant 0 : index
    %c0_75 = arith.constant 0 : index
    %112 = vector.load %arg9[%c2_73, %c0_74, %c0_75] : memref<4x32x1xf32, #tpu.memory_space<vmem>>, vector<1x32x1xf32>
    %113 = vector.shape_cast %112 : vector<1x32x1xf32> to vector<32x1xf32>
    %114 = vector.broadcast %113 : vector<32x1xf32> to vector<32x128xf32>
    %115 = arith.mulf %111, %114 : vector<32x128xf32>
    %c2_76 = arith.constant 2 : index
    %c0_77 = arith.constant 0 : index
    %c0_78 = arith.constant 0 : index
    %116 = vector.load %arg10[%c2_76, %c0_77, %c0_78] : memref<4x32x1xf32, #tpu.memory_space<vmem>>, vector<1x32x1xf32>
    %117 = vector.shape_cast %116 : vector<1x32x1xf32> to vector<32x1xf32>
    %118 = vector.broadcast %117 : vector<32x1xf32> to vector<32x128xf32>
    %119 = arith.addf %115, %118 : vector<32x128xf32>
    %120 = arith.addf %84, %119 : vector<32x128xf32>
    %121 = vector.broadcast %3 : vector<1x128xf32> to vector<32x128xf32>
    %122 = arith.mulf %120, %121 : vector<32x128xf32>
    %cst_79 = arith.constant 0.000000e+00 : f32
    %123 = vector.broadcast %cst_79 : f32 to vector<32x4xf32>
    %124 = vector.extract_strided_slice %122 {offsets = [0, 0], sizes = [32, 124], strides = [1, 1]} : vector<32x128xf32> to vector<32x124xf32>
    %125 = tpu.concatenate %123, %124 in 1 : vector<32x4xf32>, vector<32x124xf32> -> vector<32x128xf32>
    %126 = vector.extract_strided_slice %122 {offsets = [0, 4], sizes = [32, 124], strides = [1, 1]} : vector<32x128xf32> to vector<32x124xf32>
    %127 = tpu.concatenate %126, %123 in 1 : vector<32x124xf32>, vector<32x4xf32> -> vector<32x128xf32>
    %128 = tpu.concatenate %125, %122, %127 in 0 : vector<32x128xf32>, vector<32x128xf32>, vector<32x128xf32> -> vector<96x128xf32>
    %c3 = arith.constant 3 : index
    %c0_80 = arith.constant 0 : index
    %c0_81 = arith.constant 0 : index
    %129 = vector.load %arg5[%c3, %c0_80, %c0_81] : memref<4x32x96xf32, #tpu.memory_space<vmem>>, vector<1x32x96xf32>
    %130 = vector.shape_cast %129 : vector<1x32x96xf32> to vector<32x96xf32>
    %cst_82 = arith.constant dense<0.000000e+00> : vector<32x128xf32>
    %131 = tpu.matmul %130, %128, %cst_82 {dimension_numbers = #tpu.dot_dimension_numbers<[1], [0], [0], [1], [0, 0, 1, 1], [], []>} : vector<32x96xf32>, vector<96x128xf32>, vector<32x128xf32> -> vector<32x128xf32>
    %c3_83 = arith.constant 3 : index
    %c0_84 = arith.constant 0 : index
    %c0_85 = arith.constant 0 : index
    %132 = vector.load %arg6[%c3_83, %c0_84, %c0_85] : memref<4x32x1xf32, #tpu.memory_space<vmem>>, vector<1x32x1xf32>
    %133 = vector.shape_cast %132 : vector<1x32x1xf32> to vector<32x1xf32>
    %134 = vector.broadcast %133 : vector<32x1xf32> to vector<32x128xf32>
    %135 = arith.addf %131, %134 : vector<32x128xf32>
    %cst_86 = arith.constant 0.000000e+00 : f32
    %136 = vector.broadcast %cst_86 : f32 to vector<32x128xf32>
    %137 = arith.maximumf %135, %136 : vector<32x128xf32>
    %c3_87 = arith.constant 3 : index
    %c0_88 = arith.constant 0 : index
    %c0_89 = arith.constant 0 : index
    %138 = vector.load %arg7[%c3_87, %c0_88, %c0_89] : memref<4x32x32xf32, #tpu.memory_space<vmem>>, vector<1x32x32xf32>
    %139 = vector.shape_cast %138 : vector<1x32x32xf32> to vector<32x32xf32>
    %cst_90 = arith.constant dense<0.000000e+00> : vector<32x128xf32>
    %140 = tpu.matmul %139, %137, %cst_90 {dimension_numbers = #tpu.dot_dimension_numbers<[1], [0], [0], [1], [0, 0, 1, 1], [], []>} : vector<32x32xf32>, vector<32x128xf32>, vector<32x128xf32> -> vector<32x128xf32>
    %c3_91 = arith.constant 3 : index
    %c0_92 = arith.constant 0 : index
    %c0_93 = arith.constant 0 : index
    %141 = vector.load %arg8[%c3_91, %c0_92, %c0_93] : memref<4x32x1xf32, #tpu.memory_space<vmem>>, vector<1x32x1xf32>
    %142 = vector.shape_cast %141 : vector<1x32x1xf32> to vector<32x1xf32>
    %143 = vector.broadcast %142 : vector<32x1xf32> to vector<32x128xf32>
    %144 = arith.addf %140, %143 : vector<32x128xf32>
    %cst_94 = arith.constant 0.000000e+00 : f32
    %145 = vector.broadcast %cst_94 : f32 to vector<32x128xf32>
    %146 = arith.cmpf oge, %144, %145 : vector<32x128xf32>
    %cst_95 = arith.constant 2.000000e-01 : f32
    %147 = vector.broadcast %cst_95 : f32 to vector<32x128xf32>
    %148 = arith.mulf %147, %144 : vector<32x128xf32>
    %149 = arith.select %146, %144, %148 : vector<32x128xi1>, vector<32x128xf32>
    %c3_96 = arith.constant 3 : index
    %c0_97 = arith.constant 0 : index
    %c0_98 = arith.constant 0 : index
    %150 = vector.load %arg9[%c3_96, %c0_97, %c0_98] : memref<4x32x1xf32, #tpu.memory_space<vmem>>, vector<1x32x1xf32>
    %151 = vector.shape_cast %150 : vector<1x32x1xf32> to vector<32x1xf32>
    %152 = vector.broadcast %151 : vector<32x1xf32> to vector<32x128xf32>
    %153 = arith.mulf %149, %152 : vector<32x128xf32>
    %c3_99 = arith.constant 3 : index
    %c0_100 = arith.constant 0 : index
    %c0_101 = arith.constant 0 : index
    %154 = vector.load %arg10[%c3_99, %c0_100, %c0_101] : memref<4x32x1xf32, #tpu.memory_space<vmem>>, vector<1x32x1xf32>
    %155 = vector.shape_cast %154 : vector<1x32x1xf32> to vector<32x1xf32>
    %156 = vector.broadcast %155 : vector<32x1xf32> to vector<32x128xf32>
    %157 = arith.addf %153, %156 : vector<32x128xf32>
    %158 = arith.addf %122, %157 : vector<32x128xf32>
    %159 = vector.broadcast %3 : vector<1x128xf32> to vector<32x128xf32>
    %160 = arith.mulf %158, %159 : vector<32x128xf32>
    %c0_102 = arith.constant 0 : index
    %c0_103 = arith.constant 0 : index
    %161 = vector.load %arg11[%c0_102, %c0_103] : memref<8x32xf32, #tpu.memory_space<vmem>>, vector<8x32xf32>
    %cst_104 = arith.constant dense<0.000000e+00> : vector<8x128xf32>
    %162 = tpu.matmul %161, %160, %cst_104 {dimension_numbers = #tpu.dot_dimension_numbers<[1], [0], [0], [1], [0, 0, 1, 1], [], []>} : vector<8x32xf32>, vector<32x128xf32>, vector<8x128xf32> -> vector<8x128xf32>
    %c0_105 = arith.constant 0 : index
    %c0_106 = arith.constant 0 : index
    %163 = vector.load %arg12[%c0_105, %c0_106] : memref<8x1xf32, #tpu.memory_space<vmem>>, vector<8x1xf32>
    %164 = vector.broadcast %163 : vector<8x1xf32> to vector<8x128xf32>
    %165 = arith.addf %162, %164 : vector<8x128xf32>
    %166 = vector.broadcast %3 : vector<1x128xf32> to vector<8x128xf32>
    %167 = arith.mulf %165, %166 : vector<8x128xf32>
    %c0_107 = arith.constant 0 : index
    %c0_108 = arith.constant 0 : index
    %c0_109 = arith.constant 0 : index
    %168 = vector.load %arg13[%c0_107, %c0_108, %c0_109] : memref<1x8x128xf32, #tpu.memory_space<vmem>>, vector<1x8x128xf32>
    %169 = vector.shape_cast %168 : vector<1x8x128xf32> to vector<8x128xf32>
    %170 = vector.shape_cast %167 : vector<8x128xf32> to vector<1x8x128xf32>
    tpu.vector_store %arg13[%c0_107, %c0_108, %c0_109], %170 {strides = array<i32>} : memref<1x8x128xf32, #tpu.memory_space<vmem>>, vector<1x8x128xf32>,
    return
  }
  func.func @transform_0(%arg0: i32) -> (i32, i32, i32) {
    %c0_i32 = arith.constant 0 : i32
    %c0_i32_0 = arith.constant 0 : i32
    %c0_i32_1 = arith.constant 0 : i32
    return %arg0, %c0_i32, %c0_i32_0 : i32, i32, i32
  }
  func.func @transform_1(%arg0: i32) -> (i32, i32, i32) {
    %c0_i32 = arith.constant 0 : i32
    %c0_i32_0 = arith.constant 0 : i32
    %c0_i32_1 = arith.constant 0 : i32
    return %arg0, %c0_i32, %c0_i32_0 : i32, i32, i32
  }
  func.func @transform_2(%arg0: i32) -> (i32, i32) {
    %c0_i32 = arith.constant 0 : i32
    %c0_i32_0 = arith.constant 0 : i32
    %c0_i32_1 = arith.constant 0 : i32
    return %c0_i32, %c0_i32_0 : i32, i32
  }
  func.func @transform_3(%arg0: i32) -> (i32, i32) {
    %c0_i32 = arith.constant 0 : i32
    %c0_i32_0 = arith.constant 0 : i32
    %c0_i32_1 = arith.constant 0 : i32
    return %c0_i32, %c0_i32_0 : i32, i32
  }
  func.func @transform_4(%arg0: i32) -> (i32, i32, i32) {
    %c0_i32 = arith.constant 0 : i32
    %c0_i32_0 = arith.constant 0 : i32
    %c0_i32_1 = arith.constant 0 : i32
    %c0_i32_2 = arith.constant 0 : i32
    return %c0_i32, %c0_i32_0, %c0_i32_1 : i32, i32, i32
  }
  func.func @transform_5(%arg0: i32) -> (i32, i32, i32) {
    %c0_i32 = arith.constant 0 : i32
    %c0_i32_0 = arith.constant 0 : i32
    %c0_i32_1 = arith.constant 0 : i32
    %c0_i32_2 = arith.constant 0 : i32
    return %c0_i32, %c0_i32_0, %c0_i32_1 : i32, i32, i32
  }
  func.func @transform_6(%arg0: i32) -> (i32, i32, i32) {
    %c0_i32 = arith.constant 0 : i32
    %c0_i32_0 = arith.constant 0 : i32
    %c0_i32_1 = arith.constant 0 : i32
    %c0_i32_2 = arith.constant 0 : i32
    return %c0_i32, %c0_i32_0, %c0_i32_1 : i32, i32, i32
  }
  func.func @transform_7(%arg0: i32) -> (i32, i32, i32) {
    %c0_i32 = arith.constant 0 : i32
    %c0_i32_0 = arith.constant 0 : i32
    %c0_i32_1 = arith.constant 0 : i32
    %c0_i32_2 = arith.constant 0 : i32
    return %c0_i32, %c0_i32_0, %c0_i32_1 : i32, i32, i32
  }
  func.func @transform_8(%arg0: i32) -> (i32, i32, i32) {
    %c0_i32 = arith.constant 0 : i32
    %c0_i32_0 = arith.constant 0 : i32
    %c0_i32_1 = arith.constant 0 : i32
    %c0_i32_2 = arith.constant 0 : i32
    return %c0_i32, %c0_i32_0, %c0_i32_1 : i32, i32, i32
  }
  func.func @transform_9(%arg0: i32) -> (i32, i32, i32) {
    %c0_i32 = arith.constant 0 : i32
    %c0_i32_0 = arith.constant 0 : i32
    %c0_i32_1 = arith.constant 0 : i32
    %c0_i32_2 = arith.constant 0 : i32
    return %c0_i32, %c0_i32_0, %c0_i32_1 : i32, i32, i32
  }
  func.func @transform_10(%arg0: i32) -> (i32, i32) {
    %c0_i32 = arith.constant 0 : i32
    %c0_i32_0 = arith.constant 0 : i32
    %c0_i32_1 = arith.constant 0 : i32
    return %c0_i32, %c0_i32_0 : i32, i32
  }
  func.func @transform_11(%arg0: i32) -> (i32, i32) {
    %c0_i32 = arith.constant 0 : i32
    %c0_i32_0 = arith.constant 0 : i32
    %c0_i32_1 = arith.constant 0 : i32
    return %c0_i32, %c0_i32_0 : i32, i32
  }
  func.func @transform_12(%arg0: i32) -> (i32, i32, i32) {
    %c0_i32 = arith.constant 0 : i32
    %c0_i32_0 = arith.constant 0 : i32
    %c0_i32_1 = arith.constant 0 : i32
    return %arg0, %c0_i32, %c0_i32_0 : i32, i32, i32
  }
}

</mosaic_0001>

<bundles_post_ra>
// kernel: tpu_custom_call.1
= control target key start
LH: loop header
LB: loop body
LE: loop exit
PB: predicated region body
PF: predicated region fallthrough
CT: control target
= control target key end

     0   :  { %17 = vsyncpa [#allocation3], 0  ;;  %s3456_s0 = inlined_call_operand.vmem [shape: f32[2,8,128], index: 0, kind: input, shape index: {}]   ;;  %s3457_s1 = inlined_call_operand.vmem [shape: f32[2,1,128], index: 1, kind: input, shape index: {}]   ;;  %s3458_s2 = inlined_call_operand.vmem [shape: f32[32,8], index: 2, kind: input, shape index: {}]   ;;  %s3459_s3 = inlined_call_operand.vmem [shape: f32[32,1], index: 3, kind: input, shape index: {}]   ;;  %s3460_s4 = inlined_call_operand.vmem [shape: f32[4,32,96], index: 4, kind: input, shape index: {}]   ;;  %s3461_s5 = inlined_call_operand.vmem [shape: f32[4,32,1], index: 5, kind: input, shape index: {}]   ;;  %s3462_s6 = inlined_call_operand.vmem [shape: f32[4,32,32], index: 6, kind: input, shape index: {}]   ;;  %s3463_s7 = inlined_call_operand.vmem [shape: f32[4,32,1], index: 7, kind: input, shape index: {}]   ;;  %s3464_s8 = inlined_call_operand.vmem [shape: f32[4,32,1], index: 8, kind: input, shape index: {}]   ;;  %s3465_s9 = inlined_call_operand.vmem [shape: f32[4,32,1], index: 9, kind: input, shape index: {}]   ;;  %s3466_s10 = inlined_call_operand.vmem [shape: f32[8,32], index: 10, kind: input, shape index: {}]   ;;  %s3467_s11 = inlined_call_operand.vmem [shape: f32[8,1], index: 11, kind: input, shape index: {}]   ;;  %s3468_s12 = inlined_call_operand.hbm [shape: f32[2,8,128], index: 12, kind: output, shape index: {}]  }
   0x1   :  { %19 = vsyncpa [#allocation3 + $0x1], 0  ;;  %s2874_s21 = smov 0   ;;  %s2876_s22 = smov 0  }
   0x2   :  { %s2878_s23 = smov 0   ;;  %s2880_s24 = smov 0  }
   0x3 LB: > { %3473 = sst [smem:[#allocation5_spill]] %s2791_s23  ;;  %s2895_s25 = sadd.s32 4294967295, %s2795_s24   ;;  %s2795_s24 = sphi %s2880_s24, %s3480_s24   ;;  %s2791_s23 = sphi %s2878_s23, %s3485_s23   ;;  %s2787_s22 = sphi %s2876_s22, %s3484_s22   ;;  %s2783_s21 = sphi %s2874_s21, %s3483_s21  }
   0x4   : > { %s2213_s26 = sadd.s32 4294967294, %s2795_s24   ;;  %s2899_s27 = sadd.s32 1, %s2795_s24  }
   0x5   : > { %3474 = sst [smem:[#allocation6_spill]] %s2899_s27  ;;  %s294_s28 = sadd.s32 1, %s2791_s23 }
   0x6   : > { %s291_s29 = ssub.s32 %s2795_s24, %s2899_s27  ;;  %p304_p0 = scmp.ne.s32.totalorder %s2791_s23, %s2787_s22 }
   0x7   : > { %p292_p1 = scmp.eq.s32.totalorder %s291_s29, 0  ;;  %p305_p2 = scmp.eq.s32.totalorder %s2895_s25, 1 }
   0x8   : > { %p310_p3 = scmp.ne.s32.totalorder %s2787_s22, %s2783_s21  ;;  %p311_p4 = scmp.eq.s32.totalorder %s2213_s26, 1 }
   0x9   : > { %s2910_s30 = scalar_select %p292_p1, %s2791_s23, %s294_s28  }
   0xa   : > { %p2912_p5 = por %p305_p2, %p304_p0  ;;  %p2916_p6 = por %p311_p4, %p310_p3 }
   0xb   : > { %3475 = sst [smem:[#allocation7_spill]] %s2910_s30  ;;  %p2216_p7 = scmp.ge.s32.totalorder %s2795_s24, 1 }
   0xc   : > { %s3477_s14 = scalar_select %p2916_p6, 1, 0 }
   0xd   : > { %p372_p8 = scmp.lt.s32.totalorder %s2795_s24, 3 }
   0xe   : > { %3478 = sst [smem:[#allocation8_spill]] %s3477_s14 }
   0xf   : > { %p373_p9 = pnand %p2216_p7, %p372_p8 }
  0x10   : > { %p416_p10 = scmp.lt.s32.totalorder (!%p373_p9), %s2895_s25, 1  ;;  %s2798_s23 = smov (!%p373_p9), 127  }
  0x11   : > { %376 = sbr.rel (%p373_p9) target bundleno = 2677 (0xa75), region = 68  ;;  %s2799_s27 = smov (!%p373_p9), 1  }
  0x12   : > { %s2801_s16 = smov (!%p373_p9), 2   ;;  %s2803_s18 = smov (!%p373_p9), 3  }
  0x13   : > { %s2805_s20 = smov (!%p373_p9), 4   ;;  %s2808_s28 = smov (!%p373_p9), [#allocation2]  }
  0x16   : > { %v425_v0 = vld [vmem:[%s3458_s2] sm:$0xff]  ;;  %vm453_vm0 = vcmask 64512   ;;  %v2797_v1 = vmov 0   ;;  %v432_v2 = vld [vmem:[%s3459_s3 + $0x18] sm:$0xff]  ;;  %v430_v3 = vld [vmem:[%s3459_s3 + $0x8] sm:$0xff]  ;;  %s2934_s26 = scalar_select %p416_p10, %s2895_s25, 1 }
  0x17   : > { %2489 = vmatprep.mubr.msk.f32.mxu0 %vm453_vm0, %v425_v0  ;;  %2733 = vset.pattern.permute.xlu1 %v2797_v1  ;;  %v429_v4 = vld [vmem:[%s3459_s3] sm:$0xff]  ;;  %v431_v5 = vld [vmem:[%s3459_s3 + $0x10] sm:$0xff]  ;;  %v426_v7 = vld [vmem:[%s3458_s2 + $0x8] sm:$0xff]  ;;  %vm617_vm1 = vcmask 785408   ;;  %vm584_vm2 = vcmask 1039360   ;;  %vm567_vm3 = vcmask 7168  }
  0x18   : > { %2732 = vset.pattern.permute.xlu0 %v2797_v1  ;;  %440 = vperm.xlu1 %2733, %v430_v3   ;;  %s2218_s15 = sshll.u32 %s2934_s26, 3  ;;  %v427_v8 = vld [vmem:[%s3458_s2 + $0x10] sm:$0xff]  ;;  %v428_v9 = vld [vmem:[%s3458_s2 + $0x18] sm:$0xff]  ;;  %v589_v22 = vld [vmem:[%s3460_s4] sm:$0xff]  ;;  %vm747_vm5 = vcmask 261120   ;;  %vm960_vm10 = vcmask 1031168  }
  0x19   : > { %450 = vperm.xlu0 %2732, %v432_v2   ;;  %s419_s19 = scalar_lea.vmem %s3456_s0, %s2218_s15  ;;  %2519 = vmatprep.mubr.msk.f32.mxu1 %vm617_vm1, %v589_v22  ;;  %v596_v23 = vld [vmem:[%s3461_s5 + $0x18] sm:$0xff]  ;;  %v595_v24 = vld [vmem:[%s3461_s5 + $0x10] sm:$0xff]  ;;  %v594_v25 = vld [vmem:[%s3461_s5 + $0x8] sm:$0xff]  ;;  %s3066_s15 = scalar_lea.vmem %s3457_s1, %s2934_s26  ;;  %vm943_vm11 = vcmask 15360  }
  0x1a   : > { %v423_v6 = vld [vmem:[%s419_s19] sm:$0xff]  ;;  %v726_v27 = vld [vmem:[%s3463_s7 + $0x18] sm:$0xff]  ;;  %v725_v28 = vld [vmem:[%s3463_s7 + $0x10] sm:$0xff]  ;;  %s2800_s26 = smov 126  }
  0x1b   : > { %2487 = vmatprep.subr.mxu0 %v423_v6  ;;  %v593_v26 = vld [vmem:[%s3461_s5] sm:$0xff]  ;;  %v724_v29 = vld [vmem:[%s3463_s7 + $0x8] sm:$0xff]  ;;  %v860_v30 = vld [vmem:[%s3464_s8 + $0x18] sm:$0xff] }
  0x1c   : > { %435 = vperm.xlu1 %2733, %v429_v4   ;;  %2488 = vmatpush3.msra.mxu0 %v423_v6  ;;  %v723_v31 = vld [vmem:[%s3463_s7] sm:$0xff]  ;;  %v859_v32 = vld [vmem:[%s3464_s8 + $0x10] sm:$0xff]  ;;  %v888_v33 = vld [vmem:[%s3465_s9 + $0x18] sm:$0xff] }
  0x1d   : > { %445 = vperm.xlu0 %2732, %v431_v5   ;;  %2490 = vmatmul.mubr.msk.f32.vlgmr.msra.gmra.mxu0 %vm453_vm0, %v426_v7  ;;  %v858_v34 = vld [vmem:[%s3464_s8 + $0x8] sm:$0xff]  ;;  %v887_v35 = vld [vmem:[%s3465_s9 + $0x10] sm:$0xff]  ;;  %v857_v36 = vld [vmem:[%s3464_s8] sm:$0xff] }
  0x1e   : > { %2492 = vmatprep.mubr.msk.f32.mxu0 %vm453_vm0, %v427_v8  ;;  %v886_v37 = vld [vmem:[%s3465_s9 + $0x8] sm:$0xff]  ;;  %v885_v38 = vld [vmem:[%s3465_s9] sm:$0xff]  ;;  %vm2227_vm4 = vmneg %vm567_vm3  ;;  %vm1317_vm3 = vcmask 23552  }
  0x1f   : > { %v590_v47 = vld [vmem:[%s3460_s4 + $0x8] sm:$0xff]  ;;  %v591_v48 = vld [vmem:[%s3460_s4 + $0x10] sm:$0xff]  ;;  %v592_v49 = vld [vmem:[%s3460_s4 + $0x18] sm:$0xff] }
  0x20   : > { %v719_v50 = vld [vmem:[%s3462_s6] sm:$0xff]  ;;  %v720_v3 = vld [vmem:[%s3462_s6 + $0x8] sm:$0xff]  ;;  %v721_v4 = vld [vmem:[%s3462_s6 + $0x10] sm:$0xff] }
  0x21   : > { %2493 = vmatmul.mubr.msk.f32.gmra.mxu0 %vm453_vm0, %v428_v9  ;;  %v722_v5 = vld [vmem:[%s3462_s6 + $0x18] sm:$0xff]  ;;  %vm2256_vm12 = vmneg %vm943_vm11  ;;  %vm1691_vm11 = vcmask 31744  }
  0x22   : > { %2533 = vmatprep.mubr.msk.f32.mxu0 %vm747_vm5, %v719_v50 }
  0x93   : > { %v441_v12 = vpop.permute.xlu1 %440 }
  0x94   : > { %v451_v10 = vpop.permute.xlu0 %450 }
  0x97   : > { %v436_v19 = vpop.permute.xlu1 %435 }
  0x98   : > { %v446_v16 = vpop.permute.xlu0 %445 }
  0xdd   : > { %v2491_v11 = vpop.f32.mrf.mxu0 }
  0xde   : > { %v2963_v20 = vadd.f32 %v2491_v11, %v441_v12 }
  0xdf   : > { %v532_v13 = vpop.f32.mrf.mxu0 }
  0xe0   : > { %v2966_v21 = vadd.f32 %v532_v13, %v436_v19 }
  0xe1   : > { %v2494_v14 = vpop.f32.mrf.mxu0 }
  0xe2   : > { %v2958_v15 = vadd.f32 %v2494_v14, %v451_v10 }
  0xe3   : > { %v542_v17 = vpop.f32.mrf.mxu0 }
  0xe4   : > { %v2960_v18 = vadd.f32 %v542_v17, %v446_v16  ;;  %578 = vrot.lane.b32.xlu0 %v2958_v15, %s2798_s23 }
  0xe6   : > { %576 = vrot.lane.b32.xlu1 %v2960_v18, %s2798_s23 }
  0xe8   : > { %574 = vrot.lane.b32.xlu0 %v2963_v20, %s2798_s23 }
  0xea   : > { %572 = vrot.lane.b32.xlu1 %v2966_v21, %s2798_s23  ;;  %s2739_s23 = sshll.u32 %s2808_s28, 4  ;;  %s2740_s23 = int_to_ptr.vmem [resolvable:$false] %s2739_s23 }
  0xec   : > { %561 = vrot.lane.b32.xlu0 %v2958_v15, %s2799_s27 }
  0xee   : > { %559 = vrot.lane.b32.xlu1 %v2960_v18, %s2799_s27 }
  0xf0   : > { %557 = vrot.lane.b32.xlu0 %v2963_v20, %s2799_s27 }
  0xf2   : > { %555 = vrot.lane.b32.xlu1 %v2966_v21, %s2799_s27  ;;  %s413_s27 = sand.u32 1, %s2787_s22  }
  0xf3   : > { %s2217_s29 = sshll.u32 %s413_s27, 3  ;;  %s2132_s30 = scalar_lea.sflag [#allocation3], %s413_s27 }
  0xf4   : > { %614 = vperm.xlu0 %2732, %v596_v23   ;;  %s415_s17 = scalar_lea.vmem [#allocation2], %s2217_s29 }
  0xf6   : > { %609 = vperm.xlu1 %2733, %v595_v24  }
  0xf8   : > { %604 = vperm.xlu0 %2732, %v594_v25  }
  0xfa   : > { %599 = vperm.xlu1 %2733, %v593_v26  }
  0xfc   : > { %744 = vperm.xlu0 %2732, %v726_v27  }
  0xfe   : > { %739 = vperm.xlu1 %2733, %v725_v28  }
 0x100   : > { %734 = vperm.xlu0 %2732, %v724_v29  }
 0x102   : > { %878 = vperm.xlu1 %2733, %v860_v30  }
 0x104   : > { %729 = vperm.xlu0 %2732, %v723_v31  }
 0x106   : > { %873 = vperm.xlu1 %2733, %v859_v32  }
 0x108   : > { %906 = vperm.xlu0 %2732, %v888_v33  }
 0x10a   : > { %868 = vperm.xlu1 %2733, %v858_v34  }
 0x10c   : > { %901 = vperm.xlu0 %2732, %v887_v35  }
 0x10e   : > { %863 = vperm.xlu1 %2733, %v857_v36  }
 0x110   : > { %896 = vperm.xlu0 %2732, %v886_v37  }
 0x112   : > { %891 = vperm.xlu1 %2733, %v885_v38  }
 0x156   : > { %v579_v39 = vpop.permute.xlu0 %578 }
 0x157   : > { %2495 = vmatprep.subr.msk.mxu1 %vm584_vm2, %v579_v39 }
 0x158   : > { %2496 = vmatpush3.msk.msra.mxu1 %vm584_vm2, %v579_v39  ;;  %v577_v40 = vpop.permute.xlu1 %576 }
 0x159   : > { %2497 = vmatprep.subr.msk.mxu1 %vm584_vm2, %v577_v40 }
 0x15a   : > { %v575_v41 = vpop.permute.xlu0 %574  ;;  %2498 = vmatpush3.msk.msra.mxu1 %vm584_vm2, %v577_v40 }
 0x15b   : > { %2499 = vmatprep.subr.msk.mxu1 %vm584_vm2, %v575_v41 }
 0x15c   : > { %2500 = vmatpush3.msk.msra.mxu1 %vm584_vm2, %v575_v41  ;;  %v573_v42 = vpop.permute.xlu1 %572 }
 0x15d   : > { %2501 = vmatprep.subr.msk.mxu1 %vm584_vm2, %v573_v42 }
 0x15e   : > { %2502 = vmatpush3.msk.msra.mxu1 %vm584_vm2, %v573_v42  ;;  %v562_v43 = vpop.permute.xlu0 %561  ;;  %vm1334_vm2 = vcmask 1022976  }
 0x15f   : > { %2503 = vmatprep.subr.mxu1 %v2958_v15 }
 0x160   : > { %2504 = vmatpush3.msra.mxu1 %v2958_v15  ;;  %v560_v44 = vpop.permute.xlu1 %559 }
 0x161   : > { %2505 = vmatprep.subr.mxu1 %v2960_v18 }
 0x162   : > { %2506 = vmatpush3.msra.mxu1 %v2960_v18  ;;  %v558_v45 = vpop.permute.xlu0 %557 }
 0x163   : > { %2507 = vmatprep.subr.mxu1 %v2963_v20 }
 0x164   : > { %2508 = vmatpush3.msra.mxu1 %v2963_v20  ;;  %v556_v46 = vpop.permute.xlu1 %555 }
 0x165   : > { %2509 = vmatprep.subr.mxu1 %v2966_v21 }
 0x166   : > { %2510 = vmatpush3.msra.mxu1 %v2966_v21 }
 0x167   : > { %2511 = vmatprep.subr.msk.mxu1 %vm2227_vm4, %v562_v43 }
 0x168   : > { %2512 = vmatpush3.msk.msra.mxu1 %vm2227_vm4, %v562_v43 }
 0x169   : > { %2513 = vmatprep.subr.msk.mxu1 %vm2227_vm4, %v560_v44 }
 0x16a   : > { %2514 = vmatpush3.msk.msra.mxu1 %vm2227_vm4, %v560_v44 }
 0x16b   : > { %2515 = vmatprep.subr.msk.mxu1 %vm2227_vm4, %v558_v45 }
 0x16c   : > { %2516 = vmatpush3.msk.msra.mxu1 %vm2227_vm4, %v558_v45 }
 0x16d   : > { %2517 = vmatprep.subr.msk.mxu1 %vm2227_vm4, %v556_v46 }
 0x16e   : > { %2518 = vmatpush3.msk.msra.mxu1 %vm2227_vm4, %v556_v46  ;;  %vm2300_vm4 = vmneg %vm1317_vm3 }
 0x16f   : > { %2520 = vmatmul.mubr.msk.f32.vlgmr.msra.gmra.mxu1 %vm617_vm1, %v590_v47  ;;  %v615_v51 = vpop.permute.xlu0 %614  ;;  %v3070_v47 = vld [vmem:[%s3066_s15] ss:$0 sm:$0xff] }
 0x170   : > { %2522 = vmatprep.mubr.msk.f32.mxu1 %vm617_vm1, %v591_v48 }
 0x171   : > { %v610_v53 = vpop.permute.xlu1 %609 }
 0x173   : > { %2523 = vmatmul.mubr.msk.f32.gmra.mxu1 %vm617_vm1, %v592_v49  ;;  %v605_v57 = vpop.permute.xlu0 %604 }
 0x175   : > { %v600_v62 = vpop.permute.xlu1 %599 }
 0x177   : > { %v745_v6 = vpop.permute.xlu0 %744 }
 0x179   : > { %v740_v7 = vpop.permute.xlu1 %739 }
 0x17b   : > { %v735_v8 = vpop.permute.xlu0 %734 }
 0x17d   : > { %v879_v9 = vpop.permute.xlu1 %878 }
 0x17f   : > { %v730_v10 = vpop.permute.xlu0 %729 }
 0x181   : > { %v874_v11 = vpop.permute.xlu1 %873 }
 0x183   : > { %v907_v12 = vpop.permute.xlu0 %906 }
 0x185   : > { %v869_v14 = vpop.permute.xlu1 %868 }
 0x187   : > { %v902_v24 = vpop.permute.xlu0 %901 }
 0x189   : > { %v864_v29 = vpop.permute.xlu1 %863 }
 0x18b   : > { %v897_v38 = vpop.permute.xlu0 %896 }
 0x18d   : > { %v892_v43 = vpop.permute.xlu1 %891 }
 0x22f   : > { %v2521_v52 = vpop.f32.mrf.mxu1 }
 0x230   : > { %v702_v59 = vadd.f32 %v2521_v52, %v605_v57  ;;  %v2274_v57 = vld [vmem:[%s3463_s7 + $0x30] sm:$0xff] }
 0x231   : > { %v696_v54 = vpop.f32.mrf.mxu1 }
 0x232   : > { %v697_v63 = vadd.f32 %v696_v54, %v600_v62  ;;  %v716_v1 = vmax.f32 %v702_v59, 0.0  ;;  %v2249_v54 = vld [vmem:[%s3461_s5 + $0x28] sm:$0xff]  ;;  %v2283_v59 = vld [vmem:[%s3464_s8 + $0x38] sm:$0xff] }
 0x233   : > { %v2524_v55 = vpop.f32.mrf.mxu1  ;;  %v2287_v62 = vld [vmem:[%s3465_s9 + $0x38] sm:$0xff] }
 0x234   : > { %v712_v56 = vadd.f32 %v2524_v55, %v615_v51  ;;  %v715_v2 = vmax.f32 %v697_v63, 0.0  ;;  %v2248_v55 = vld [vmem:[%s3461_s5 + $0x20] sm:$0xff]  ;;  %v2281_v63 = vld [vmem:[%s3464_s8 + $0x28] sm:$0xff] }
 0x235   : > { %v706_v58 = vpop.f32.mrf.mxu1 }
 0x236   : > { %v718_v60 = vmax.f32 %v712_v56, 0.0  ;;  %v707_v61 = vadd.f32 %v706_v58, %v610_v53  ;;  %v2250_v53 = vld [vmem:[%s3461_s5 + $0x30] sm:$0xff]  ;;  %v2275_v56 = vld [vmem:[%s3463_s7 + $0x38] sm:$0xff]  ;;  %v2273_v58 = vld [vmem:[%s3463_s7 + $0x28] sm:$0xff] }
 0x238   : > { %v717_v0 = vmax.f32 %v707_v61, 0.0  ;;  %2525 = vmatprep.subr.mxu0 %v718_v60  ;;  %v2282_v61 = vld [vmem:[%s3464_s8 + $0x30] sm:$0xff] }
 0x239   : > { %2526 = vmatpush3.msra.mxu0 %v718_v60  ;;  %v2272_v60 = vld [vmem:[%s3463_s7 + $0x20] sm:$0xff] }
 0x23a   : > { %2527 = vmatprep.subr.mxu0 %v717_v0 }
 0x23b   : > { %2528 = vmatpush3.msra.mxu0 %v717_v0  ;;  %v2286_v0 = vld [vmem:[%s3465_s9 + $0x30] sm:$0xff] }
 0x23c   : > { %2529 = vmatprep.subr.mxu0 %v716_v1 }
 0x23d   : > { %2530 = vmatpush3.msra.mxu0 %v716_v1  ;;  %v2280_v1 = vld [vmem:[%s3464_s8 + $0x20] sm:$0xff] }
 0x23e   : > { %2531 = vmatprep.subr.mxu0 %v715_v2 }
 0x23f   : > { %2532 = vmatpush3.msra.mxu0 %v715_v2  ;;  %v2285_v2 = vld [vmem:[%s3465_s9 + $0x28] sm:$0xff] }
 0x240   : > { %2534 = vmatmul.mubr.msk.f32.vlgmr.msra.gmra.mxu0 %vm747_vm5, %v720_v3  ;;  %v2284_v3 = vld [vmem:[%s3465_s9 + $0x20] sm:$0xff] }
 0x241   : > { %2536 = vmatprep.mubr.msk.f32.mxu0 %vm747_vm5, %v721_v4 }
 0x244   : > { %2537 = vmatmul.mubr.msk.f32.gmra.mxu0 %vm747_vm5, %v722_v5 }
 0x300   : > { %v2535_v13 = vpop.f32.mrf.mxu0 }
 0x301   : > { %v832_v16 = vadd.f32 %v2535_v13, %v735_v8  ;;  %v2246_v13 = vld [vmem:[%s3460_s4 + $0x30] sm:$0xff] }
 0x302   : > { %v826_v17 = vpop.f32.mrf.mxu0 }
 0x303   : > { %vm846_vm6 = vcmp.ge.f32.partialorder %v832_v16, 0.0  ;;  %v850_v19 = vmul.f32 0.2, %v832_v16  ;;  %v827_v22 = vadd.f32 %v826_v17, %v730_v10 }
 0x304   : > { %v2538_v23 = vpop.f32.mrf.mxu0 }
 0x305   : > { %v854_v25 = vsel %vm846_vm6, %v832_v16, %v850_v19  ;;  %vm845_vm7 = vcmp.ge.f32.partialorder %v827_v22, 0.0  ;;  %v849_v26 = vmul.f32 0.2, %v827_v22  ;;  %v842_v27 = vadd.f32 %v2538_v23, %v745_v6  ;;  %v2268_v16 = vld [vmem:[%s3462_s6 + $0x20] sm:$0xff] }
 0x306   : > { %v836_v28 = vpop.f32.mrf.mxu0  ;;  %v882_v33 = vmul.f32 %v869_v14, %v854_v25  ;;  %v2247_v14 = vld [vmem:[%s3460_s4 + $0x38] sm:$0xff]  ;;  %2577 = vmatprep.mubr.msk.f32.mxu1 %vm747_vm5, %v2268_v16 }
 0x307   : > { %v853_v30 = vsel %vm845_vm7, %v827_v22, %v849_v26  ;;  %vm848_vm8 = vcmp.ge.f32.partialorder %v842_v27, 0.0  ;;  %v852_v31 = vmul.f32 0.2, %v842_v27  ;;  %v837_v32 = vadd.f32 %v836_v28, %v740_v7 }
 0x308   : > { %v881_v36 = vmul.f32 %v864_v29, %v853_v30  ;;  %v910_v40 = vadd.f32 %v897_v38, %v882_v33  ;;  %v2271_v38 = vld [vmem:[%s3462_s6 + $0x38] sm:$0xff] }
 0x309   : > { %v856_v34 = vsel %vm848_vm8, %v842_v27, %v852_v31  ;;  %vm847_vm9 = vcmp.ge.f32.partialorder %v837_v32, 0.0  ;;  %v851_v35 = vmul.f32 0.2, %v837_v32 }
 0x30a   : > { %v884_v37 = vmul.f32 %v879_v9, %v856_v34  ;;  %v909_v44 = vadd.f32 %v892_v43, %v881_v36  ;;  %v914_v48 = vadd.f32 %v910_v40, %v2963_v20  ;;  %v2244_v20 = vld [vmem:[%s3460_s4 + $0x20] sm:$0xff]  ;;  %v2269_v36 = vld [vmem:[%s3462_s6 + $0x28] sm:$0xff] }
 0x30b   : > { %v855_v39 = vsel %vm847_vm9, %v837_v32, %v851_v35  ;;  %2563 = vmatprep.mubr.msk.f32.mxu0 %vm617_vm1, %v2244_v20 }
 0x30c   : > { %v912_v41 = vadd.f32 %v907_v12, %v884_v37  ;;  %v883_v42 = vmul.f32 %v874_v11, %v855_v39  ;;  %v913_v51 = vadd.f32 %v909_v44, %v2966_v21  ;;  %v2251_v21 = vld [vmem:[%s3461_s5 + $0x38] sm:$0xff]  ;;  %v2245_v12 = vld [vmem:[%s3460_s4 + $0x28] sm:$0xff]  ;;  %v2270_v37 = vld [vmem:[%s3462_s6 + $0x30] sm:$0xff] }
 0x30e   : > { %v916_v45 = vadd.f32 %v912_v41, %v2958_v15  ;;  %v911_v46 = vadd.f32 %v902_v24, %v883_v42  ;;  %v3084_v15 = vmul.f32 %v3070_v47, %v914_v48 }
 0x310   : > { %v915_v49 = vadd.f32 %v911_v46, %v2960_v18  ;;  %v3075_v50 = vmul.f32 %v3070_v47, %v916_v45  ;;  %v3088_v18 = vmul.f32 %v3070_v47, %v913_v51 }
 0x312   : > { %954 = vrot.lane.b32.xlu0 %v3075_v50, %s2800_s26  ;;  %v3080_v52 = vmul.f32 %v3070_v47, %v915_v49 }
 0x314   : > { %952 = vrot.lane.b32.xlu1 %v3080_v52, %s2800_s26 }
 0x316   : > { %950 = vrot.lane.b32.xlu0 %v3084_v15, %s2800_s26 }
 0x318   : > { %948 = vrot.lane.b32.xlu1 %v3088_v18, %s2800_s26  ;;  %s2378_s26 = sshll.u32 %s2895_s25, 7  ;;  %s2741_s25 = scalar_lea.vmem %s2740_s23, 256 }
 0x31a   : > { %937 = vrot.lane.b32.xlu0 %v3075_v50, %s2801_s16 }
 0x31c   : > { %935 = vrot.lane.b32.xlu1 %v3080_v52, %s2801_s16 }
 0x31e   : > { %933 = vrot.lane.b32.xlu0 %v3084_v15, %s2801_s16 }
 0x320   : > { %931 = vrot.lane.b32.xlu1 %v3088_v18, %s2801_s16  ;;  %s2802_s16 = smov 125  }
 0x322   : > { %992 = vperm.xlu0 %2732, %v2251_v21  }
 0x324   : > { %987 = vperm.xlu1 %2733, %v2250_v53  }
 0x326   : > { %982 = vperm.xlu0 %2732, %v2249_v54  }
 0x328   : > { %977 = vperm.xlu1 %2733, %v2248_v55  }
 0x32a   : > { %1123 = vperm.xlu0 %2732, %v2275_v56  }
 0x32c   : > { %1118 = vperm.xlu1 %2733, %v2274_v57  }
 0x32e   : > { %1113 = vperm.xlu0 %2732, %v2273_v58  }
 0x330   : > { %1257 = vperm.xlu1 %2733, %v2283_v59  }
 0x332   : > { %1108 = vperm.xlu0 %2732, %v2272_v60  }
 0x334   : > { %1252 = vperm.xlu1 %2733, %v2282_v61  }
 0x336   : > { %1286 = vperm.xlu0 %2732, %v2287_v62  }
 0x338   : > { %1247 = vperm.xlu1 %2733, %v2281_v63  }
 0x33a   : > { %1281 = vperm.xlu0 %2732, %v2286_v0  }
 0x33c   : > { %1242 = vperm.xlu1 %2733, %v2280_v1  }
 0x33e   : > { %1276 = vperm.xlu0 %2732, %v2285_v2  }
 0x340   : > { %1271 = vperm.xlu1 %2733, %v2284_v3  }
 0x384   : > { %v955_v4 = vpop.permute.xlu0 %954 }
 0x385   : > { %2539 = vmatprep.subr.msk.mxu0 %vm960_vm10, %v955_v4 }
 0x386   : > { %2540 = vmatpush3.msk.msra.mxu0 %vm960_vm10, %v955_v4  ;;  %v953_v5 = vpop.permute.xlu1 %952 }
 0x387   : > { %2541 = vmatprep.subr.msk.mxu0 %vm960_vm10, %v953_v5 }
 0x388   : > { %v951_v6 = vpop.permute.xlu0 %950  ;;  %2542 = vmatpush3.msk.msra.mxu0 %vm960_vm10, %v953_v5 }
 0x389   : > { %2543 = vmatprep.subr.msk.mxu0 %vm960_vm10, %v951_v6 }
 0x38a   : > { %2544 = vmatpush3.msk.msra.mxu0 %vm960_vm10, %v951_v6  ;;  %v949_v7 = vpop.permute.xlu1 %948 }
 0x38b   : > { %2545 = vmatprep.subr.msk.mxu0 %vm960_vm10, %v949_v7 }
 0x38c   : > { %2546 = vmatpush3.msk.msra.mxu0 %vm960_vm10, %v949_v7  ;;  %v938_v8 = vpop.permute.xlu0 %937  ;;  %vm1708_vm10 = vcmask 1014784  }
 0x38d   : > { %2547 = vmatprep.subr.mxu0 %v3075_v50 }
 0x38e   : > { %2548 = vmatpush3.msra.mxu0 %v3075_v50  ;;  %v936_v9 = vpop.permute.xlu1 %935 }
 0x38f   : > { %2549 = vmatprep.subr.mxu0 %v3080_v52 }
 0x390   : > { %2550 = vmatpush3.msra.mxu0 %v3080_v52  ;;  %v934_v10 = vpop.permute.xlu0 %933 }
 0x391   : > { %2551 = vmatprep.subr.mxu0 %v3084_v15 }
 0x392   : > { %2552 = vmatpush3.msra.mxu0 %v3084_v15  ;;  %v932_v11 = vpop.permute.xlu1 %931 }
 0x393   : > { %2553 = vmatprep.subr.mxu0 %v3088_v18 }
 0x394   : > { %2554 = vmatpush3.msra.mxu0 %v3088_v18 }
 0x395   : > { %2555 = vmatprep.subr.msk.mxu0 %vm2256_vm12, %v938_v8 }
 0x396   : > { %2556 = vmatpush3.msk.msra.mxu0 %vm2256_vm12, %v938_v8 }
 0x397   : > { %2557 = vmatprep.subr.msk.mxu0 %vm2256_vm12, %v936_v9 }
 0x398   : > { %2558 = vmatpush3.msk.msra.mxu0 %vm2256_vm12, %v936_v9 }
 0x399   : > { %2559 = vmatprep.subr.msk.mxu0 %vm2256_vm12, %v934_v10 }
 0x39a   : > { %2560 = vmatpush3.msk.msra.mxu0 %vm2256_vm12, %v934_v10 }
 0x39b   : > { %2561 = vmatprep.subr.msk.mxu0 %vm2256_vm12, %v932_v11 }
 0x39c   : > { %2562 = vmatpush3.msk.msra.mxu0 %vm2256_vm12, %v932_v11  ;;  %vm2344_vm12 = vmneg %vm1691_vm11 }
 0x39d   : > { %2564 = vmatmul.mubr.msk.f32.vlgmr.msra.gmra.mxu0 %vm617_vm1, %v2245_v12  ;;  %v993_v17 = vpop.permute.xlu0 %992 }
 0x39e   : > { %2566 = vmatprep.mubr.msk.f32.mxu0 %vm617_vm1, %v2246_v13 }
 0x39f   : > { %v988_v22 = vpop.permute.xlu1 %987 }
 0x3a1   : > { %2567 = vmatmul.mubr.msk.f32.gmra.mxu0 %vm617_vm1, %v2247_v14  ;;  %v983_v26 = vpop.permute.xlu0 %982 }
 0x3a3   : > { %v978_v31 = vpop.permute.xlu1 %977 }
 0x3a5   : > { %v1124_v39 = vpop.permute.xlu0 %1123 }
 0x3a7   : > { %v1119_v40 = vpop.permute.xlu1 %1118 }
 0x3a9   : > { %v1114_v41 = vpop.permute.xlu0 %1113 }
 0x3ab   : > { %v1258_v42 = vpop.permute.xlu1 %1257 }
 0x3ad   : > { %v1109_v43 = vpop.permute.xlu0 %1108 }
 0x3af   : > { %v1253_v44 = vpop.permute.xlu1 %1252 }
 0x3b1   : > { %v1287_v45 = vpop.permute.xlu0 %1286 }
 0x3b3   : > { %v1248_v48 = vpop.permute.xlu1 %1247 }
 0x3b5   : > { %v1282_v54 = vpop.permute.xlu0 %1281 }
 0x3b7   : > { %v1243_v59 = vpop.permute.xlu1 %1242 }
 0x3b9   : > { %v1277_v4 = vpop.permute.xlu0 %1276 }
 0x3bb   : > { %v1272_v9 = vpop.permute.xlu1 %1271 }
 0x45d   : > { %v2565_v19 = vpop.f32.mrf.mxu0 }
 0x45e   : > { %v1079_v28 = vadd.f32 %v2565_v19, %v983_v26  ;;  %v2318_v26 = vld [vmem:[%s3463_s7 + $0x50] sm:$0xff] }
 0x45f   : > { %v1073_v23 = vpop.f32.mrf.mxu0 }
 0x460   : > { %v1074_v32 = vadd.f32 %v1073_v23, %v978_v31  ;;  %v1093_v34 = vmax.f32 %v1079_v28, 0.0  ;;  %v2293_v23 = vld [vmem:[%s3461_s5 + $0x48] sm:$0xff]  ;;  %v2327_v28 = vld [vmem:[%s3464_s8 + $0x58] sm:$0xff] }
 0x461   : > { %v2568_v24 = vpop.f32.mrf.mxu0  ;;  %v2331_v31 = vld [vmem:[%s3465_s9 + $0x58] sm:$0xff] }
 0x462   : > { %v1089_v25 = vadd.f32 %v2568_v24, %v993_v17  ;;  %v1092_v35 = vmax.f32 %v1074_v32, 0.0  ;;  %v2292_v24 = vld [vmem:[%s3461_s5 + $0x40] sm:$0xff]  ;;  %v2325_v32 = vld [vmem:[%s3464_s8 + $0x48] sm:$0xff] }
 0x463   : > { %v1083_v27 = vpop.f32.mrf.mxu0 }
 0x464   : > { %v1095_v29 = vmax.f32 %v1089_v25, 0.0  ;;  %v1084_v30 = vadd.f32 %v1083_v27, %v988_v22  ;;  %v2294_v22 = vld [vmem:[%s3461_s5 + $0x50] sm:$0xff]  ;;  %v2319_v25 = vld [vmem:[%s3463_s7 + $0x58] sm:$0xff]  ;;  %v2317_v27 = vld [vmem:[%s3463_s7 + $0x48] sm:$0xff] }
 0x466   : > { %v1094_v33 = vmax.f32 %v1084_v30, 0.0  ;;  %2569 = vmatprep.subr.mxu1 %v1095_v29  ;;  %v2326_v30 = vld [vmem:[%s3464_s8 + $0x50] sm:$0xff] }
 0x467   : > { %2570 = vmatpush3.msra.mxu1 %v1095_v29  ;;  %v2316_v29 = vld [vmem:[%s3463_s7 + $0x40] sm:$0xff] }
 0x468   : > { %2571 = vmatprep.subr.mxu1 %v1094_v33 }
 0x469   : > { %2572 = vmatpush3.msra.mxu1 %v1094_v33  ;;  %v2330_v33 = vld [vmem:[%s3465_s9 + $0x50] sm:$0xff] }
 0x46a   : > { %2573 = vmatprep.subr.mxu1 %v1093_v34 }
 0x46b   : > { %2574 = vmatpush3.msra.mxu1 %v1093_v34  ;;  %v2324_v34 = vld [vmem:[%s3464_s8 + $0x40] sm:$0xff] }
 0x46c   : > { %2575 = vmatprep.subr.mxu1 %v1092_v35 }
 0x46d   : > { %2576 = vmatpush3.msra.mxu1 %v1092_v35  ;;  %v2329_v35 = vld [vmem:[%s3465_s9 + $0x48] sm:$0xff] }
 0x46e   : > { %2578 = vmatmul.mubr.msk.f32.vlgmr.msra.gmra.mxu1 %vm747_vm5, %v2269_v36  ;;  %v2328_v36 = vld [vmem:[%s3465_s9 + $0x40] sm:$0xff] }
 0x46f   : > { %2580 = vmatprep.mubr.msk.f32.mxu1 %vm747_vm5, %v2270_v37 }
 0x472   : > { %2581 = vmatmul.mubr.msk.f32.gmra.mxu1 %vm747_vm5, %v2271_v38 }
 0x52e   : > { %v2579_v46 = vpop.f32.mrf.mxu1 }
 0x52f   : > { %v1210_v49 = vadd.f32 %v2579_v46, %v1114_v41  ;;  %v2290_v46 = vld [vmem:[%s3460_s4 + $0x50] sm:$0xff] }
 0x530   : > { %v1204_v51 = vpop.f32.mrf.mxu1 }
 0x531   : > { %vm1224_vm13 = vcmp.ge.f32.partialorder %v1210_v49, 0.0  ;;  %v1228_v20 = vmul.f32 0.2, %v1210_v49  ;;  %v1205_v21 = vadd.f32 %v1204_v51, %v1109_v43 }
 0x532   : > { %v2582_v53 = vpop.f32.mrf.mxu1 }
 0x533   : > { %v1232_v55 = vsel %vm1224_vm13, %v1210_v49, %v1228_v20  ;;  %vm1223_vm14 = vcmp.ge.f32.partialorder %v1205_v21, 0.0  ;;  %v1227_v56 = vmul.f32 0.2, %v1205_v21  ;;  %v1220_v57 = vadd.f32 %v2582_v53, %v1124_v39  ;;  %v2312_v49 = vld [vmem:[%s3462_s6 + $0x40] sm:$0xff] }
 0x534   : > { %v1214_v58 = vpop.f32.mrf.mxu1  ;;  %v1261_v63 = vmul.f32 %v1248_v48, %v1232_v55  ;;  %v2291_v48 = vld [vmem:[%s3460_s4 + $0x58] sm:$0xff]  ;;  %2621 = vmatprep.mubr.msk.f32.mxu0 %vm747_vm5, %v2312_v49 }
 0x535   : > { %v1231_v60 = vsel %vm1223_vm14, %v1205_v21, %v1227_v56  ;;  %vm1226_vm15 = vcmp.ge.f32.partialorder %v1220_v57, 0.0  ;;  %v1230_v61 = vmul.f32 0.2, %v1220_v57  ;;  %v1215_v62 = vadd.f32 %v1214_v58, %v1119_v40 }
 0x536   : > { %v1260_v2 = vmul.f32 %v1243_v59, %v1231_v60  ;;  %v1290_v6 = vadd.f32 %v1277_v4, %v1261_v63  ;;  %v2315_v4 = vld [vmem:[%s3462_s6 + $0x58] sm:$0xff] }
 0x537   : > { %v1234_v0 = vsel %vm1226_vm15, %v1220_v57, %v1230_v61  ;;  %vm1225_vm0 = vcmp.ge.f32.partialorder %v1215_v62, 0.0  ;;  %v1229_v1 = vmul.f32 0.2, %v1215_v62 }
 0x538   : > { %v1263_v3 = vmul.f32 %v1258_v42, %v1234_v0  ;;  %v1289_v10 = vadd.f32 %v1272_v9, %v1260_v2  ;;  %v1294_v13 = vadd.f32 %v1290_v6, %v3084_v15  ;;  %v2288_v15 = vld [vmem:[%s3460_s4 + $0x40] sm:$0xff]  ;;  %v2313_v2 = vld [vmem:[%s3462_s6 + $0x48] sm:$0xff] }
 0x539   : > { %v1233_v5 = vsel %vm1225_vm0, %v1215_v62, %v1229_v1  ;;  %2607 = vmatprep.mubr.msk.f32.mxu1 %vm617_vm1, %v2288_v15 }
 0x53a   : > { %v1292_v7 = vadd.f32 %v1287_v45, %v1263_v3  ;;  %v1262_v8 = vmul.f32 %v1253_v44, %v1233_v5  ;;  %v1293_v17 = vadd.f32 %v1289_v10, %v3088_v18  ;;  %v2295_v18 = vld [vmem:[%s3461_s5 + $0x58] sm:$0xff]  ;;  %v2289_v45 = vld [vmem:[%s3460_s4 + $0x48] sm:$0xff]  ;;  %v2314_v3 = vld [vmem:[%s3462_s6 + $0x50] sm:$0xff] }
 0x53c   : > { %v1296_v11 = vadd.f32 %v1292_v7, %v3075_v50  ;;  %v1291_v12 = vadd.f32 %v1282_v54, %v1262_v8  ;;  %v3196_v50 = vmul.f32 %v3070_v47, %v1294_v13 }
 0x53e   : > { %v1295_v14 = vadd.f32 %v1291_v12, %v3080_v52  ;;  %v3187_v16 = vmul.f32 %v3070_v47, %v1296_v11  ;;  %v3200_v52 = vmul.f32 %v3070_v47, %v1293_v17 }
 0x540   : > { %1328 = vrot.lane.b32.xlu0 %v3187_v16, %s2802_s16  ;;  %v3192_v19 = vmul.f32 %v3070_v47, %v1295_v14 }
 0x542   : > { %1326 = vrot.lane.b32.xlu1 %v3192_v19, %s2802_s16 }
 0x544   : > { %1324 = vrot.lane.b32.xlu0 %v3196_v50, %s2802_s16 }
 0x546   : > { %1322 = vrot.lane.b32.xlu1 %v3200_v52, %s2802_s16  ;;  %s2145_s16 = sshll.u32 %s415_s17, 4  ;;  %s2146_s16 = int_to_ptr.vmem [resolvable:$true] %s2145_s16 }
 0x547   : > { %p2742_p0 = scmp.lt.s32.totalorder %s2146_s16, %s2740_s23 }
 0x548   : > { %1311 = vrot.lane.b32.xlu0 %v3187_v16, %s2803_s18 }
 0x54a   : > { %1309 = vrot.lane.b32.xlu1 %v3192_v19, %s2803_s18 }
 0x54c   : > { %1307 = vrot.lane.b32.xlu0 %v3196_v50, %s2803_s18 }
 0x54e   : > { %1305 = vrot.lane.b32.xlu1 %v3200_v52, %s2803_s18  ;;  %s2804_s18 = smov 124  }
 0x550   : > { %1366 = vperm.xlu0 %2732, %v2295_v18  }
 0x552   : > { %1361 = vperm.xlu1 %2733, %v2294_v22  }
 0x554   : > { %1356 = vperm.xlu0 %2732, %v2293_v23  }
 0x556   : > { %1351 = vperm.xlu1 %2733, %v2292_v24  }
 0x558   : > { %1497 = vperm.xlu0 %2732, %v2319_v25  }
 0x55a   : > { %1492 = vperm.xlu1 %2733, %v2318_v26  }
 0x55c   : > { %1487 = vperm.xlu0 %2732, %v2317_v27  }
 0x55e   : > { %1631 = vperm.xlu1 %2733, %v2327_v28  }
 0x560   : > { %1482 = vperm.xlu0 %2732, %v2316_v29  }
 0x562   : > { %1626 = vperm.xlu1 %2733, %v2326_v30  }
 0x564   : > { %1660 = vperm.xlu0 %2732, %v2331_v31  }
 0x566   : > { %1621 = vperm.xlu1 %2733, %v2325_v32  }
 0x568   : > { %1655 = vperm.xlu0 %2732, %v2330_v33  }
 0x56a   : > { %1616 = vperm.xlu1 %2733, %v2324_v34  }
 0x56c   : > { %1650 = vperm.xlu0 %2732, %v2329_v35  }
 0x56e   : > { %1645 = vperm.xlu1 %2733, %v2328_v36  }
 0x5b2   : > { %v1329_v37 = vpop.permute.xlu0 %1328 }
 0x5b3   : > { %2583 = vmatprep.subr.msk.mxu1 %vm1334_vm2, %v1329_v37 }
 0x5b4   : > { %2584 = vmatpush3.msk.msra.mxu1 %vm1334_vm2, %v1329_v37  ;;  %v1327_v38 = vpop.permute.xlu1 %1326 }
 0x5b5   : > { %2585 = vmatprep.subr.msk.mxu1 %vm1334_vm2, %v1327_v38 }
 0x5b6   : > { %v1325_v39 = vpop.permute.xlu0 %1324  ;;  %2586 = vmatpush3.msk.msra.mxu1 %vm1334_vm2, %v1327_v38 }
 0x5b7   : > { %2587 = vmatprep.subr.msk.mxu1 %vm1334_vm2, %v1325_v39 }
 0x5b8   : > { %2588 = vmatpush3.msk.msra.mxu1 %vm1334_vm2, %v1325_v39  ;;  %v1323_v40 = vpop.permute.xlu1 %1322 }
 0x5b9   : > { %2589 = vmatprep.subr.msk.mxu1 %vm1334_vm2, %v1323_v40 }
 0x5ba   : > { %2590 = vmatpush3.msk.msra.mxu1 %vm1334_vm2, %v1323_v40  ;;  %v1312_v41 = vpop.permute.xlu0 %1311 }
 0x5bb   : > { %2591 = vmatprep.subr.mxu1 %v3187_v16 }
 0x5bc   : > { %2592 = vmatpush3.msra.mxu1 %v3187_v16  ;;  %v1310_v42 = vpop.permute.xlu1 %1309 }
 0x5bd   : > { %2593 = vmatprep.subr.mxu1 %v3192_v19 }
 0x5be   : > { %2594 = vmatpush3.msra.mxu1 %v3192_v19  ;;  %v1308_v43 = vpop.permute.xlu0 %1307 }
 0x5bf   : > { %2595 = vmatprep.subr.mxu1 %v3196_v50 }
 0x5c0   : > { %2596 = vmatpush3.msra.mxu1 %v3196_v50  ;;  %v1306_v44 = vpop.permute.xlu1 %1305 }
 0x5c1   : > { %2597 = vmatprep.subr.mxu1 %v3200_v52 }
 0x5c2   : > { %2598 = vmatpush3.msra.mxu1 %v3200_v52 }
 0x5c3   : > { %2599 = vmatprep.subr.msk.mxu1 %vm2300_vm4, %v1312_v41 }
 0x5c4   : > { %2600 = vmatpush3.msk.msra.mxu1 %vm2300_vm4, %v1312_v41 }
 0x5c5   : > { %2601 = vmatprep.subr.msk.mxu1 %vm2300_vm4, %v1310_v42 }
 0x5c6   : > { %2602 = vmatpush3.msk.msra.mxu1 %vm2300_vm4, %v1310_v42 }
 0x5c7   : > { %2603 = vmatprep.subr.msk.mxu1 %vm2300_vm4, %v1308_v43 }
 0x5c8   : > { %2604 = vmatpush3.msk.msra.mxu1 %vm2300_vm4, %v1308_v43 }
 0x5c9   : > { %2605 = vmatprep.subr.msk.mxu1 %vm2300_vm4, %v1306_v44 }
 0x5ca   : > { %2606 = vmatpush3.msk.msra.mxu1 %vm2300_vm4, %v1306_v44 }
 0x5cb   : > { %2608 = vmatmul.mubr.msk.f32.vlgmr.msra.gmra.mxu1 %vm617_vm1, %v2289_v45  ;;  %v1367_v51 = vpop.permute.xlu0 %1366 }
 0x5cc   : > { %2610 = vmatprep.mubr.msk.f32.mxu1 %vm617_vm1, %v2290_v46 }
 0x5cd   : > { %v1362_v21 = vpop.permute.xlu1 %1361 }
 0x5cf   : > { %2611 = vmatmul.mubr.msk.f32.gmra.mxu1 %vm617_vm1, %v2291_v48  ;;  %v1357_v56 = vpop.permute.xlu0 %1356 }
 0x5d1   : > { %v1352_v61 = vpop.permute.xlu1 %1351 }
 0x5d3   : > { %v1498_v5 = vpop.permute.xlu0 %1497 }
 0x5d5   : > { %v1493_v6 = vpop.permute.xlu1 %1492 }
 0x5d7   : > { %v1488_v7 = vpop.permute.xlu0 %1487 }
 0x5d9   : > { %v1632_v8 = vpop.permute.xlu1 %1631 }
 0x5db   : > { %v1483_v9 = vpop.permute.xlu0 %1482 }
 0x5dd   : > { %v1627_v10 = vpop.permute.xlu1 %1626 }
 0x5df   : > { %v1661_v11 = vpop.permute.xlu0 %1660 }
 0x5e1   : > { %v1622_v13 = vpop.permute.xlu1 %1621 }
 0x5e3   : > { %v1656_v23 = vpop.permute.xlu0 %1655 }
 0x5e5   : > { %v1617_v28 = vpop.permute.xlu1 %1616 }
 0x5e7   : > { %v1651_v37 = vpop.permute.xlu0 %1650 }
 0x5e9   : > { %v1646_v42 = vpop.permute.xlu1 %1645 }
 0x68b   : > { %v2609_v20 = vpop.f32.mrf.mxu1 }
 0x68c   : > { %v1453_v58 = vadd.f32 %v2609_v20, %v1357_v56  ;;  %v2362_v56 = vld [vmem:[%s3463_s7 + $0x70] sm:$0xff] }
 0x68d   : > { %v1447_v53 = vpop.f32.mrf.mxu1 }
 0x68e   : > { %v1448_v62 = vadd.f32 %v1447_v53, %v1352_v61  ;;  %v1467_v0 = vmax.f32 %v1453_v58, 0.0  ;;  %v2337_v53 = vld [vmem:[%s3461_s5 + $0x68] sm:$0xff]  ;;  %v2371_v58 = vld [vmem:[%s3464_s8 + $0x78] sm:$0xff] }
 0x68f   : > { %v2612_v54 = vpop.f32.mrf.mxu1  ;;  %v2375_v61 = vld [vmem:[%s3465_s9 + $0x78] sm:$0xff] }
 0x690   : > { %v1463_v55 = vadd.f32 %v2612_v54, %v1367_v51  ;;  %v1466_v1 = vmax.f32 %v1448_v62, 0.0  ;;  %v2336_v54 = vld [vmem:[%s3461_s5 + $0x60] sm:$0xff]  ;;  %v2369_v62 = vld [vmem:[%s3464_s8 + $0x68] sm:$0xff] }
 0x691   : > { %v1457_v57 = vpop.f32.mrf.mxu1 }
 0x692   : > { %v1469_v59 = vmax.f32 %v1463_v55, 0.0  ;;  %v1458_v60 = vadd.f32 %v1457_v57, %v1362_v21  ;;  %v2338_v21 = vld [vmem:[%s3461_s5 + $0x70] sm:$0xff]  ;;  %v2363_v55 = vld [vmem:[%s3463_s7 + $0x78] sm:$0xff]  ;;  %v2361_v57 = vld [vmem:[%s3463_s7 + $0x68] sm:$0xff] }
 0x694   : > { %v1468_v63 = vmax.f32 %v1458_v60, 0.0  ;;  %2613 = vmatprep.subr.mxu0 %v1469_v59  ;;  %v2370_v60 = vld [vmem:[%s3464_s8 + $0x70] sm:$0xff] }
 0x695   : > { %2614 = vmatpush3.msra.mxu0 %v1469_v59  ;;  %v2360_v59 = vld [vmem:[%s3463_s7 + $0x60] sm:$0xff] }
 0x696   : > { %2615 = vmatprep.subr.mxu0 %v1468_v63 }
 0x697   : > { %2616 = vmatpush3.msra.mxu0 %v1468_v63  ;;  %v2374_v63 = vld [vmem:[%s3465_s9 + $0x70] sm:$0xff] }
 0x698   : > { %2617 = vmatprep.subr.mxu0 %v1467_v0 }
 0x699   : > { %2618 = vmatpush3.msra.mxu0 %v1467_v0  ;;  %v2368_v0 = vld [vmem:[%s3464_s8 + $0x60] sm:$0xff] }
 0x69a   : > { %2619 = vmatprep.subr.mxu0 %v1466_v1 }
 0x69b   : > { %2620 = vmatpush3.msra.mxu0 %v1466_v1  ;;  %v2373_v1 = vld [vmem:[%s3465_s9 + $0x68] sm:$0xff] }
 0x69c   : > { %2622 = vmatmul.mubr.msk.f32.vlgmr.msra.gmra.mxu0 %vm747_vm5, %v2313_v2  ;;  %v2372_v2 = vld [vmem:[%s3465_s9 + $0x60] sm:$0xff] }
 0x69d   : > { %2624 = vmatprep.mubr.msk.f32.mxu0 %vm747_vm5, %v2314_v3  ;;  %v2050_v3 = vld [vmem:[%s3467_s11] sm:$0xff] }
 0x6a0   : > { %2625 = vmatmul.mubr.msk.f32.gmra.mxu0 %vm747_vm5, %v2315_v4 }
 0x75c   : > { %v2623_v12 = vpop.f32.mrf.mxu0 }
 0x75d   : > { %v1584_v14 = vadd.f32 %v2623_v12, %v1488_v7  ;;  %v2333_v12 = vld [vmem:[%s3460_s4 + $0x68] sm:$0xff] }
 0x75e   : > { %v1578_v17 = vpop.f32.mrf.mxu0 }
 0x75f   : > { %vm1598_vm6 = vcmp.ge.f32.partialorder %v1584_v14, 0.0  ;;  %v1602_v15 = vmul.f32 0.2, %v1584_v14  ;;  %v1579_v18 = vadd.f32 %v1578_v17, %v1483_v9  ;;  %v2356_v17 = vld [vmem:[%s3462_s6 + $0x60] sm:$0xff] }
 0x760   : > { %v2626_v22 = vpop.f32.mrf.mxu0  ;;  %2665 = vmatprep.mubr.msk.f32.mxu1 %vm747_vm5, %v2356_v17 }
 0x761   : > { %v1606_v24 = vsel %vm1598_vm6, %v1584_v14, %v1602_v15  ;;  %vm1597_vm7 = vcmp.ge.f32.partialorder %v1579_v18, 0.0  ;;  %v1601_v25 = vmul.f32 0.2, %v1579_v18  ;;  %v1594_v26 = vadd.f32 %v2626_v22, %v1498_v5  ;;  %v2335_v14 = vld [vmem:[%s3460_s4 + $0x78] sm:$0xff] }
 0x762   : > { %v1588_v27 = vpop.f32.mrf.mxu0  ;;  %v1635_v32 = vmul.f32 %v1622_v13, %v1606_v24  ;;  %v2334_v13 = vld [vmem:[%s3460_s4 + $0x70] sm:$0xff] }
 0x763   : > { %v1605_v29 = vsel %vm1597_vm7, %v1579_v18, %v1601_v25  ;;  %vm1600_vm8 = vcmp.ge.f32.partialorder %v1594_v26, 0.0  ;;  %v1604_v30 = vmul.f32 0.2, %v1594_v26  ;;  %v1589_v31 = vadd.f32 %v1588_v27, %v1493_v6 }
 0x764   : > { %v1634_v35 = vmul.f32 %v1617_v28, %v1605_v29  ;;  %v1664_v39 = vadd.f32 %v1651_v37, %v1635_v32  ;;  %v2358_v37 = vld [vmem:[%s3462_s6 + $0x70] sm:$0xff] }
 0x765   : > { %v1608_v33 = vsel %vm1600_vm8, %v1594_v26, %v1604_v30  ;;  %vm1599_vm9 = vcmp.ge.f32.partialorder %v1589_v31, 0.0  ;;  %v1603_v34 = vmul.f32 0.2, %v1589_v31 }
 0x766   : > { %v1637_v36 = vmul.f32 %v1632_v8, %v1608_v33  ;;  %v1663_v43 = vadd.f32 %v1646_v42, %v1634_v35  ;;  %v1668_v46 = vadd.f32 %v1664_v39, %v3196_v50  ;;  %v2332_v50 = vld [vmem:[%s3460_s4 + $0x60] sm:$0xff]  ;;  %v2806_v39 = vmov 0.0  }
 0x767   : > { %v1607_v38 = vsel %vm1599_vm9, %v1589_v31, %v1603_v34  ;;  %2651 = vmatprep.mubr.msk.f32.mxu0 %vm617_vm1, %v2332_v50 }
 0x768   : > { %v1666_v40 = vadd.f32 %v1661_v11, %v1637_v36  ;;  %v1636_v41 = vmul.f32 %v1627_v10, %v1607_v38  ;;  %v1667_v51 = vadd.f32 %v1663_v43, %v3200_v52  ;;  %v2339_v52 = vld [vmem:[%s3461_s5 + $0x78] sm:$0xff]  ;;  %v2357_v36 = vld [vmem:[%s3462_s6 + $0x68] sm:$0xff] }
 0x769   : > { %v2359_v38 = vld [vmem:[%s3462_s6 + $0x78] sm:$0xff] }
 0x76a   : > { %v1670_v44 = vadd.f32 %v1666_v40, %v3187_v16  ;;  %v1665_v45 = vadd.f32 %v1656_v23, %v1636_v41  ;;  %v3308_v16 = vmul.f32 %v3070_v47, %v1668_v46 }
 0x76c   : > { %v1669_v48 = vadd.f32 %v1665_v45, %v3192_v19  ;;  %v3299_v49 = vmul.f32 %v3070_v47, %v1670_v44  ;;  %v3312_v19 = vmul.f32 %v3070_v47, %v1667_v51 }
 0x76e   : > { %1702 = vrot.lane.b32.xlu0 %v3299_v49, %s2804_s18  ;;  %v3304_v20 = vmul.f32 %v3070_v47, %v1669_v48 }
 0x770   : > { %1700 = vrot.lane.b32.xlu1 %v3304_v20, %s2804_s18 }
 0x772   : > { %1698 = vrot.lane.b32.xlu0 %v3308_v16, %s2804_s18 }
 0x774   : > { %1696 = vrot.lane.b32.xlu1 %v3312_v19, %s2804_s18  ;;  %s2143_s18 = scalar_lea.hbm %s3468_s12, %s2378_s26 }
 0x776   : > { %1685 = vrot.lane.b32.xlu0 %v3299_v49, %s2805_s20 }
 0x778   : > { %1683 = vrot.lane.b32.xlu1 %v3304_v20, %s2805_s20 }
 0x77a   : > { %1681 = vrot.lane.b32.xlu0 %v3308_v16, %s2805_s20 }
 0x77c   : > { %1679 = vrot.lane.b32.xlu1 %v3312_v19, %s2805_s20  ;;  %s2735_s20 = scalar_lea.vmem %s2146_s16, 128 }
 0x77d   : > { %p2736_p11 = scmp.ne.s32.totalorder %s2146_s16, %s2735_s20  ;;  %p2743_p1 = scmp.lt.s32.totalorder %s2741_s25, %s2735_s20 }
 0x77e   : > { %1740 = vperm.xlu0 %2732, %v2339_v52  }
 0x77f   : > { %p2737_p12 = pnand %p2736_p11, %p2912_p5  ;;  %p2744_p2 = por %p2743_p1, %p2742_p0 }
 0x780   : > { %1735 = vperm.xlu1 %2733, %v2338_v21  }
 0x781   : > { %p2738_p13 = pneg %p2737_p12 }
 0x782   : > { %1730 = vperm.xlu0 %2732, %v2337_v53  }
 0x783   : > { %p2745_p3 = pnand %p2744_p2, %p2738_p13 }
 0x784   : > { %1725 = vperm.xlu1 %2733, %v2336_v54  }
 0x786   : > { %1871 = vperm.xlu0 %2732, %v2363_v55  }
 0x788   : > { %1866 = vperm.xlu1 %2733, %v2362_v56  }
 0x78a   : > { %1861 = vperm.xlu0 %2732, %v2361_v57  }
 0x78c   : > { %2005 = vperm.xlu1 %2733, %v2371_v58  }
 0x78e   : > { %1856 = vperm.xlu0 %2732, %v2360_v59  }
 0x790   : > { %2000 = vperm.xlu1 %2733, %v2370_v60  }
 0x792   : > { %2034 = vperm.xlu0 %2732, %v2375_v61  }
 0x794   : > { %1995 = vperm.xlu1 %2733, %v2369_v62  }
 0x796   : > { %2029 = vperm.xlu0 %2732, %v2374_v63  }
 0x798   : > { %1990 = vperm.xlu1 %2733, %v2368_v0  }
 0x79a   : > { %2024 = vperm.xlu0 %2732, %v2373_v1  }
 0x79c   : > { %2019 = vperm.xlu1 %2733, %v2372_v2  }
 0x79e   : > { %2053 = vperm.xlu0 %2732, %v2050_v3  }
 0x7e0   : > { %v1703_v4 = vpop.permute.xlu0 %1702 }
 0x7e1   : > { %2627 = vmatprep.subr.msk.mxu0 %vm1708_vm10, %v1703_v4 }
 0x7e2   : > { %2628 = vmatpush3.msk.msra.mxu0 %vm1708_vm10, %v1703_v4  ;;  %v1701_v5 = vpop.permute.xlu1 %1700 }
 0x7e3   : > { %2629 = vmatprep.subr.msk.mxu0 %vm1708_vm10, %v1701_v5 }
 0x7e4   : > { %v1699_v6 = vpop.permute.xlu0 %1698  ;;  %2630 = vmatpush3.msk.msra.mxu0 %vm1708_vm10, %v1701_v5 }
 0x7e5   : > { %2631 = vmatprep.subr.msk.mxu0 %vm1708_vm10, %v1699_v6 }
 0x7e6   : > { %2632 = vmatpush3.msk.msra.mxu0 %vm1708_vm10, %v1699_v6  ;;  %v1697_v7 = vpop.permute.xlu1 %1696 }
 0x7e7   : > { %2633 = vmatprep.subr.msk.mxu0 %vm1708_vm10, %v1697_v7 }
 0x7e8   : > { %2634 = vmatpush3.msk.msra.mxu0 %vm1708_vm10, %v1697_v7  ;;  %v1686_v8 = vpop.permute.xlu0 %1685 }
 0x7e9   : > { %2635 = vmatprep.subr.mxu0 %v3299_v49 }
 0x7ea   : > { %2636 = vmatpush3.msra.mxu0 %v3299_v49  ;;  %v1684_v9 = vpop.permute.xlu1 %1683 }
 0x7eb   : > { %2637 = vmatprep.subr.mxu0 %v3304_v20 }
 0x7ec   : > { %2638 = vmatpush3.msra.mxu0 %v3304_v20  ;;  %v1682_v10 = vpop.permute.xlu0 %1681 }
 0x7ed   : > { %2639 = vmatprep.subr.mxu0 %v3308_v16 }
 0x7ee   : > { %2640 = vmatpush3.msra.mxu0 %v3308_v16  ;;  %v1680_v11 = vpop.permute.xlu1 %1679 }
 0x7ef   : > { %2641 = vmatprep.subr.mxu0 %v3312_v19 }
 0x7f0   : > { %2642 = vmatpush3.msra.mxu0 %v3312_v19 }
 0x7f1   : > { %2643 = vmatprep.subr.msk.mxu0 %vm2344_vm12, %v1686_v8 }
 0x7f2   : > { %2644 = vmatpush3.msk.msra.mxu0 %vm2344_vm12, %v1686_v8 }
 0x7f3   : > { %2645 = vmatprep.subr.msk.mxu0 %vm2344_vm12, %v1684_v9 }
 0x7f4   : > { %2646 = vmatpush3.msk.msra.mxu0 %vm2344_vm12, %v1684_v9 }
 0x7f5   : > { %2647 = vmatprep.subr.msk.mxu0 %vm2344_vm12, %v1682_v10 }
 0x7f6   : > { %2648 = vmatpush3.msk.msra.mxu0 %vm2344_vm12, %v1682_v10 }
 0x7f7   : > { %2649 = vmatprep.subr.msk.mxu0 %vm2344_vm12, %v1680_v11 }
 0x7f8   : > { %2650 = vmatpush3.msk.msra.mxu0 %vm2344_vm12, %v1680_v11 }
 0x7f9   : > { %2652 = vmatmul.mubr.msk.f32.vlgmr.msra.gmra.mxu0 %vm617_vm1, %v2333_v12  ;;  %v1741_v15 = vpop.permute.xlu0 %1740 }
 0x7fa   : > { %2654 = vmatprep.mubr.msk.f32.mxu0 %vm617_vm1, %v2334_v13 }
 0x7fb   : > { %v1736_v22 = vpop.permute.xlu1 %1735 }
 0x7fd   : > { %2655 = vmatmul.mubr.msk.f32.gmra.mxu0 %vm617_vm1, %v2335_v14  ;;  %v1731_v26 = vpop.permute.xlu0 %1730  ;;  %vm2807_vm1 = vmmov 0  }
 0x7ff   : > { %v1726_v31 = vpop.permute.xlu1 %1725 }
 0x801   : > { %v1872_v40 = vpop.permute.xlu0 %1871 }
 0x803   : > { %v1867_v41 = vpop.permute.xlu1 %1866 }
 0x805   : > { %v1862_v42 = vpop.permute.xlu0 %1861 }
 0x807   : > { %v2006_v43 = vpop.permute.xlu1 %2005 }
 0x809   : > { %v1857_v44 = vpop.permute.xlu0 %1856 }
 0x80b   : > { %v2001_v45 = vpop.permute.xlu1 %2000 }
 0x80d   : > { %v2035_v46 = vpop.permute.xlu0 %2034 }
 0x80f   : > { %v1996_v51 = vpop.permute.xlu1 %1995 }
 0x811   : > { %v2030_v55 = vpop.permute.xlu0 %2029 }
 0x813   : > { %v1991_v60 = vpop.permute.xlu1 %1990 }
 0x815   : > { %v2025_v5 = vpop.permute.xlu0 %2024 }
 0x817   : > { %v2020_v10 = vpop.permute.xlu1 %2019 }
 0x8b9   : > { %v2653_v18 = vpop.f32.mrf.mxu0 }
 0x8ba   : > { %v1827_v28 = vadd.f32 %v2653_v18, %v1731_v26 }
 0x8bb   : > { %v1821_v23 = vpop.f32.mrf.mxu0 }
 0x8bc   : > { %v1822_v32 = vadd.f32 %v1821_v23, %v1726_v31  ;;  %v1841_v34 = vmax.f32 %v1827_v28, 0.0 }
 0x8bd   : > { %v2656_v24 = vpop.f32.mrf.mxu0 }
 0x8be   : > { %v1837_v25 = vadd.f32 %v2656_v24, %v1741_v15  ;;  %v1840_v35 = vmax.f32 %v1822_v32, 0.0 }
 0x8bf   : > { %v1831_v27 = vpop.f32.mrf.mxu0 }
 0x8c0   : > { %v1843_v29 = vmax.f32 %v1837_v25, 0.0  ;;  %v1832_v30 = vadd.f32 %v1831_v27, %v1736_v22 }
 0x8c2   : > { %v1842_v33 = vmax.f32 %v1832_v30, 0.0  ;;  %2657 = vmatprep.subr.mxu1 %v1843_v29 }
 0x8c3   : > { %2658 = vmatpush3.msra.mxu1 %v1843_v29 }
 0x8c4   : > { %2659 = vmatprep.subr.mxu1 %v1842_v33 }
 0x8c5   : > { %2660 = vmatpush3.msra.mxu1 %v1842_v33 }
 0x8c6   : > { %2661 = vmatprep.subr.mxu1 %v1841_v34 }
 0x8c7   : > { %2662 = vmatpush3.msra.mxu1 %v1841_v34 }
 0x8c8   : > { %2663 = vmatprep.subr.mxu1 %v1840_v35 }
 0x8c9   : > { %2664 = vmatpush3.msra.mxu1 %v1840_v35 }
 0x8ca   : > { %2666 = vmatmul.mubr.msk.f32.vlgmr.msra.gmra.mxu1 %vm747_vm5, %v2357_v36  ;;  %2671 = vmatprep.subr.mxu1 %v2806_v39 }
 0x8cb   : > { %2668 = vmatprep.mubr.msk.f32.mxu1 %vm747_vm5, %v2358_v37 }
 0x8ce   : > { %2669 = vmatmul.mubr.msk.f32.gmra.mxu1 %vm747_vm5, %v2359_v38 }
 0x8cf   : > { %2679 = vmatprep.mubr.msk.f32.mxu1 %vm2807_vm1, %v2806_v39 }
 0x98a   : > { %v2667_v48 = vpop.f32.mrf.mxu1 }
 0x98b   : > { %v1958_v50 = vadd.f32 %v2667_v48, %v1862_v42 }
 0x98c   : > { %v1952_v52 = vpop.f32.mrf.mxu1 }
 0x98d   : > { %vm1972_vm13 = vcmp.ge.f32.partialorder %v1958_v50, 0.0  ;;  %v1976_v21 = vmul.f32 0.2, %v1958_v50  ;;  %v1953_v53 = vadd.f32 %v1952_v52, %v1857_v44 }
 0x98e   : > { %v2670_v54 = vpop.f32.mrf.mxu1 }
 0x98f   : > { %v1980_v56 = vsel %vm1972_vm13, %v1958_v50, %v1976_v21  ;;  %vm1971_vm14 = vcmp.ge.f32.partialorder %v1953_v53, 0.0  ;;  %v1975_v57 = vmul.f32 0.2, %v1953_v53  ;;  %v1968_v58 = vadd.f32 %v2670_v54, %v1872_v40 }
 0x990   : > { %v1962_v59 = vpop.f32.mrf.mxu1  ;;  %v2009_v0 = vmul.f32 %v1996_v51, %v1980_v56 }
 0x991   : > { %v1979_v61 = vsel %vm1971_vm14, %v1953_v53, %v1975_v57  ;;  %vm1974_vm15 = vcmp.ge.f32.partialorder %v1968_v58, 0.0  ;;  %v1978_v62 = vmul.f32 0.2, %v1968_v58  ;;  %v1963_v63 = vadd.f32 %v1962_v59, %v1867_v41 }
 0x992   : > { %v2008_v3 = vmul.f32 %v1991_v60, %v1979_v61  ;;  %v2038_v7 = vadd.f32 %v2025_v5, %v2009_v0 }
 0x993   : > { %v1982_v1 = vsel %vm1974_vm15, %v1968_v58, %v1978_v62  ;;  %vm1973_vm0 = vcmp.ge.f32.partialorder %v1963_v63, 0.0  ;;  %v1977_v2 = vmul.f32 0.2, %v1963_v63 }
 0x994   : > { %v2011_v4 = vmul.f32 %v2006_v43, %v1982_v1  ;;  %v2037_v11 = vadd.f32 %v2020_v10, %v2008_v3  ;;  %v2042_v15 = vadd.f32 %v2038_v7, %v3308_v16  ;;  %v2054_v16 = vpop.permute.xlu0 %2053 }
 0x995   : > { %v1981_v6 = vsel %vm1973_vm0, %v1963_v63, %v1977_v2 }
 0x996   : > { %v2040_v8 = vadd.f32 %v2035_v46, %v2011_v4  ;;  %v2010_v9 = vmul.f32 %v2001_v45, %v1981_v6  ;;  %v2041_v22 = vadd.f32 %v2037_v11, %v3312_v19  ;;  %v2046_v23 = vmul.f32 %v3070_v47, %v2042_v15 }
 0x998   : > { %v2039_v12 = vadd.f32 %v2030_v55, %v2010_v9  ;;  %v2044_v13 = vadd.f32 %v2040_v8, %v3299_v49  ;;  %v2734_v49 = vld [vmem:[%s3066_s15] ss:$0 sm:$0xff] }
 0x999   : > { %v2045_v24 = vmul.f32 %v2734_v49, %v2041_v22 }
 0x99a   : > { %v2048_v14 = vmul.f32 %v3070_v47, %v2044_v13  ;;  %v2043_v17 = vadd.f32 %v2039_v12, %v3304_v20  ;;  %v2049_v20 = vld [vmem:[%s3466_s10] sm:$0xff] }
 0x99c   : > { %2672 = vmatpush3.msra.mxu1 %v2048_v14  ;;  %v2047_v18 = vmul.f32 %v3070_v47, %v2043_v17 }
 0x99d   : > { %2673 = vmatprep.subr.mxu1 %v2806_v39 }
 0x99e   : > { %2674 = vmatpush3.msra.mxu1 %v2047_v18 }
 0x99f   : > { %2675 = vmatprep.subr.mxu1 %v2806_v39 }
 0x9a0   : > { %2676 = vmatpush3.msra.mxu1 %v2046_v23 }
 0x9a1   : > { %2677 = vmatprep.subr.mxu1 %v2806_v39 }
 0x9a2   : > { %2678 = vmatpush3.msra.mxu1 %v2045_v24 }
 0x9a3   : > { %2680 = vmatmul.mubr.msk.f32.vlgmr.msra.gmra.mxu1 %vm747_vm5, %v2049_v20 }
 0xa63   : > { %v2125_v19 = vpop.f32.mrf.mxu1 }
 0xa64   : > { %v2126_v47 = vadd.f32 %v2125_v19, %v2054_v16 }
 0xa65   : > { %v2681_v25 = vpop.f32.mrf.mxu1 }
 0xa66   : > { %v2129_v26 = vmul.f32 %v2734_v49, %v2126_v47 }
 0xa68   : > { %2130 = vst [vmem:[%s415_s17] sm:$0xff] %v2129_v26 }
 0xa69   : > { %2748 = shalt.err (!%p2745_p3)
}
 0xa6a   : > { %s2749_s14 = scalar_lea.hbm %s2143_s18, 128  ;;  %s2753_s26 = scalar_lea.hbm %s3468_s12, 256 }
 0xa6b   : > { %p2750_p4 = scmp.ne.s32.totalorder %s2143_s18, %s2749_s14  ;;  %p2754_p9 = scmp.lt.s32.totalorder %s2143_s18, %s3468_s12 }
 0xa6c   : > { %p2755_p10 = scmp.lt.s32.totalorder %s2753_s26, %s2749_s14 }
 0xa6d   : > { %p2751_p7 = pnand %p2750_p4, %p2912_p5 }
 0xa6e   : > { %p2756_p11 = por %p2755_p10, %p2754_p9 }
 0xa6f   : > { %p2752_p8 = pneg %p2751_p7 }
 0xa71   : > { %p2757_p12 = pnand %p2756_p11, %p2752_p8 }
 0xa73   : > { %2760 = shalt.err (!%p2757_p12)
}
 0xa74   : > { %2682 = dma.vmem_to_hbm [thread:$0]  (%p2912_p5), %s2146_s16, 128, %s2143_s18, %s2132_s30  }
 0xa75 PF: > { %p2688_p13 = scmp.ge.s32.totalorder %s2795_s24, 2  ;;  %s2157_s20 = sand.u32 1, %s2783_s21  }
 0xa76   : > { %s2158_s28 = scalar_lea.sflag [#allocation3], %s2157_s20 }
 0xa77   : > { %p2685_p0 = pnand %p2688_p13, %p2916_p6 }
 0xa79   : > { %p2686_p1 = pneg %p2685_p0 }
 0xa7b   : > { %2778 = dma.done.wait (%p2686_p1), %s2158_s28, 128  }
 0xa7c   : > { %2780 = vsyncadd (%p2686_p1), %s2158_s28, 4294967168  ;;  %s3480_s24 = sld [smem:[#allocation6_spill]]  ;;  %s3483_s21 = smov %s2787_s22 }
 0xa7d   : > { %s3481_s23 = sld [smem:[#allocation5_spill]] }
 0xa7e   : > { %s3482_s25 = sld [smem:[#allocation7_spill]] }
 0xa82   : > { %p22_p2 = scmp.ge.s32.totalorder %s3480_s24, 4  }
 0xa83   : > { %s3484_s22 = smov %s3481_s23 }
 0xa84   : > { %s3485_s23 = smov %s3482_s25  ;;  %24 = sbr.rel (!%p22_p2) target bundleno = 3 (0x3), region = 124 }
 0xa89   :  { %2163 = vsyncpa [#allocation3], 1 }
 0xa8a   :  { %2165 = vsyncpa [#allocation3 + $0x1], 1 }

</bundles_post_ra>
